<compile_context>
chip_gen: v7x
topology: tpu7x:2x2x1
jax: 0.10.0
libtpu: 0.0.40
codegen_flags: <defaults>
</compile_context>

<pallas_src>
import jax
import jax.numpy as jnp
from jax.experimental import pallas as pl
from jax.experimental.pallas import tpu as pltpu


# ----------------------------------------------------------------------------
# Generation-aware defaults (VMEM limit + vocab tile target)
# ----------------------------------------------------------------------------
_GEN_CACHE = None


def _gen_defaults():
    """Returns (vmem_limit_bytes, vocab_tile_target) for the local TPU generation."""
    global _GEN_CACHE
    if _GEN_CACHE is None:
        try:
            kind = jax.devices()[0].device_kind.lower()
        except Exception:  # pragma: no cover - defensive
            kind = ""
        if "v7" in kind:
            # 64 MiB physical VMEM per TensorCore on v7x: leave compiler headroom.
            _GEN_CACHE = (48 * 1024 * 1024, 2048)
        elif any(tag in kind for tag in ("v5 lite", "v5e", "v6 lite", "v6e", "v6")):
            # 128 MiB physical VMEM: larger tiles, fewer grid steps, bigger DMAs.
            _GEN_CACHE = (100 * 1024 * 1024, 4096)
        else:
            # Unknown generation: conservative (known-good) settings.
            _GEN_CACHE = (64 * 1024 * 1024, 2048)
    return _GEN_CACHE


def _round_up(x, m):
    return ((x + m - 1) // m) * m


def _vocab_tile(v_padded, target):
    assert v_padded % 128 == 0, "vocab dim must be padded to a multiple of 128"
    tv = min(v_padded, max(128, (target // 128) * 128))
    while v_padded % tv != 0:
        tv -= 128
    return tv


# ----------------------------------------------------------------------------
# Kernel 1: attention energies + masked softmax + context + GRU step (fused)
# ----------------------------------------------------------------------------
def attn_gru_kernel(hidden_ref, eout_ref, mask_ref, embed_ref,
                    wh_ref, we_ref, ba_ref, v_ref,
                    wih_e_ref, wih_c_ref, bih_ref, whh_ref, bhh_ref,
                    xcat_ref, newhid_ref):
    B, L, H = eout_ref.shape
    E = embed_ref.shape[1]
    A = wh_ref.shape[1]

    h = hidden_ref[...]                                     # (B, H)    f32
    e = eout_ref[...]                                       # (B, L, H) bf16

    # energy = tanh(cat(hidden_rep, e_output) @ W_att^T + b)
    #        = tanh(hidden @ Wh + e_output @ We + b)
    hproj = jnp.dot(h.astype(jnp.bfloat16), wh_ref[...],
                    preferred_element_type=jnp.float32)     # (B, A)
    eproj = jnp.dot(e.reshape(B * L, H), we_ref[...],
                    preferred_element_type=jnp.float32)     # (B*L, A)
    energy = jnp.tanh(hproj[:, None, :] + eproj.reshape(B, L, A)
                      + ba_ref[...][None])                  # (B, L, A)

    # scores = energy @ v  done as VPU multiply + lane reduce over A.
    scores = jnp.sum(energy * v_ref[...][None], axis=-1)    # (B, L), lane-dense
    # masked_fill(mask == False, -1e10), computed in-kernel from the int mask.
    scores = jnp.where(mask_ref[...] != 0, scores, -1e10)

    # softmax over L (lane axis); approximate reciprocal goes to the EUP slot.
    smax = jnp.max(scores, axis=-1, keepdims=True)
    ex = jnp.exp(scores - smax)
    a = ex * pl.reciprocal(jnp.sum(ex, axis=-1, keepdims=True), approx=True)

    # context = bmm(a, e_output): VPU multiply + sublane reduce over L
    # (avoids a terrible-occupancy M=1 MXU contraction per batch element).
    ctx = jnp.sum(e.astype(jnp.float32) * a[:, :, None], axis=1)   # (B, H)

    # --- GRU cell (single step, gate order r, z, n), input = cat(embed, ctx) ---
    x_e = embed_ref[...]                                     # (B, E) f32
    gi = (jnp.dot(x_e.astype(jnp.bfloat16), wih_e_ref[...],
                  preferred_element_type=jnp.float32)
          + jnp.dot(ctx.astype(jnp.bfloat16), wih_c_ref[...],
                    preferred_element_type=jnp.float32)
          + bih_ref[...])                                    # (B, 3H)
    gh = (jnp.dot(h.astype(jnp.bfloat16), whh_ref[...],
                  preferred_element_type=jnp.float32)
          + bhh_ref[...])                                    # (B, 3H)

    i_r, i_z, i_n = gi[:, :H], gi[:, H:2 * H], gi[:, 2 * H:]
    h_r, h_z, h_n = gh[:, :H], gh[:, H:2 * H], gh[:, 2 * H:]
    r = jax.nn.sigmoid(i_r + h_r)
    z = jax.nn.sigmoid(i_z + h_z)
    n = jnp.tanh(i_n + r * h_n)
    h_new = (1.0 - z) * n + z * h                            # (B, H)

    newhid_ref[...] = h_new
    # x_cat = [embed | h_new | ctx] in bf16; E and H are multiples of 128, so
    # these are lane-aligned (unmasked) stores.
    xcat_ref[:, :E] = x_e.astype(jnp.bfloat16)
    xcat_ref[:, E:E + H] = h_new.astype(jnp.bfloat16)
    xcat_ref[:, E + H:] = ctx.astype(jnp.bfloat16)


def attention_gru(hidden, e_output, mask, embed,
                  wh, we, ba, v_row, wih_e, wih_c, bih, whh, bhh):
    B, L, H = e_output.shape
    E = embed.shape[1]
    A = wh.shape[1]
    K = E + 2 * H
    vmem_limit, _ = _gen_defaults()

    # e_output dominates kernel-1 HBM traffic -> stream it as bf16.
    # (In production the encoder output should already be stored in bf16.)
    e_bf16 = e_output.astype(jnp.bfloat16)
    mask_i32 = mask.astype(jnp.int32)

    def full(shp):
        return pl.BlockSpec(shp, lambda i, _n=len(shp): (0,) * _n)

    xcat, new_hidden = pl.pallas_call(
        attn_gru_kernel,
        out_shape=(jax.ShapeDtypeStruct((B, K), jnp.bfloat16),
                   jax.ShapeDtypeStruct((B, H), jnp.float32)),
        grid=(1,),
        in_specs=[
            full((B, H)), full((B, L, H)), full((B, L)), full((B, E)),
            full((H, A)), full((H, A)), full((1, A)), full((1, A)),
            full((E, 3 * H)), full((H, 3 * H)), full((1, 3 * H)),
            full((H, 3 * H)), full((1, 3 * H)),
        ],
        out_specs=(full((B, K)), full((B, H))),
        compiler_params=pltpu.CompilerParams(
            dimension_semantics=("arbitrary",),
            vmem_limit_bytes=vmem_limit),
    )(hidden, e_bf16, mask_i32, embed, wh, we, ba, v_row,
      wih_e, wih_c, bih, whh, bhh)
    return xcat, new_hidden


# ----------------------------------------------------------------------------
# Kernel 2: vocab-tiled output projection (pure, parallel grid over V)
# ----------------------------------------------------------------------------
def vocab_proj_kernel(xcat_ref, w_ref, b_ref, pred_ref):
    # prediction tile = cat(embed, gru_out, context) @ W_out[:, tile] + b[tile]
    # One contiguous bf16 weight stream per tile, f32 accumulation on the MXU.
    pred_ref[...] = (
        jnp.dot(xcat_ref[...], w_ref[...], preferred_element_type=jnp.float32)
        + b_ref[...])


def vocab_projection(xcat, w_out, b_out, *, tv=None):
    B, K = xcat.shape
    Kw, Vp = w_out.shape
    assert K == Kw
    vmem_limit, tv_target = _gen_defaults()
    if tv is None:
        tv = _vocab_tile(Vp, tv_target)
    assert Vp % tv == 0

    return pl.pallas_call(
        vocab_proj_kernel,
        out_shape=jax.ShapeDtypeStruct((B, Vp), jnp.float32),
        grid=(Vp // tv,),
        in_specs=[
            # Grid-invariant (B, K) activation: tiny (~KBs), so default
            # double-buffering is harmless now that the GRU weights live in
            # kernel 1 instead of here.
            pl.BlockSpec((B, K), lambda j: (0, 0)),
            pl.BlockSpec((K, tv), lambda j: (0, j)),
            pl.BlockSpec((1, tv), lambda j: (0, j)),
        ],
        out_specs=pl.BlockSpec((B, tv), lambda j: (0, j)),
        compiler_params=pltpu.CompilerParams(
            # No cross-step state -> genuinely parallel; lets v7x shard the
            # HBM-bound weight stream across both TensorCores.
            dimension_semantics=("parallel",),
            vmem_limit_bytes=vmem_limit),
    )(xcat, w_out, b_out)


# ----------------------------------------------------------------------------
# Decoder forward (glue + kernels)
# ----------------------------------------------------------------------------
def decoder_forward(tokens, hidden, e_output, mask, params, *,
                    vocab_size=None, vocab_tile=None):
    # embedding lookup + dropout (identity, eval mode) -- plain-JAX glue.
    embed = params["emb_table"][tokens]                      # (B, E_pad)
    # fused attention + context + GRU step (Pallas kernel 1)
    xcat, new_hidden = attention_gru(
        hidden, e_output, mask, embed,
        params["wh"], params["we"], params["ba"], params["v"],
        params["wih_e"], params["wih_c"], params["bih"],
        params["whh"], params["bhh"])
    # vocab-tiled output projection (Pallas kernel 2, parallel over V tiles)
    pred = vocab_projection(xcat, params["w_out"], params["b_out"], tv=vocab_tile)
    if vocab_size is not None and vocab_size != pred.shape[1]:
        pred = pred[:, :vocab_size]                          # drop padded vocab cols
    return pred, new_hidden


# ----------------------------------------------------------------------------
# Parameter prep: pad E and V to multiples of 128, pre-concatenate W_out,
# store large streamed weights in bf16.
# ----------------------------------------------------------------------------
def make_params(key, *, E, H, V, A=None, dtype_w=jnp.bfloat16):
    A = H if A is None else A
    E_pad = _round_up(E, 128)
    V_pad = _round_up(V, 128)
    ks = iter(jax.random.split(key, 16))
    s = 0.05

    def rnd(shape, scale=s):
        return jax.random.normal(next(ks), shape, jnp.float32) * scale

    # embedding table (replaces embedding.pkl); columns zero-padded to E_pad.
    emb = jnp.pad(rnd((V, E), 0.1), ((0, 0), (0, E_pad - E)))

    # Attention: Linear(2H -> A) split into hidden / e_output halves, + v row.
    wh, we, ba, v_row = rnd((H, A)), rnd((H, A)), rnd((1, A)), rnd((1, A))

    # GRU(E + H -> H): W_ih split into embed / context parts (gate order r,z,n).
    wih_e = jnp.pad(rnd((E, 3 * H)), ((0, E_pad - E), (0, 0)))
    wih_c, bih = rnd((H, 3 * H)), rnd((1, 3 * H))
    whh, bhh = rnd((H, 3 * H)), rnd((1, 3 * H))

    # hidden2out: Linear(E + H + H -> V), pre-concatenated along the input dim
    # in the order cat(embed, gru_out, context); rows padded for E, cols for V.
    wo_e = jnp.pad(rnd((E, V)), ((0, E_pad - E), (0, 0)))
    wo_g, wo_c = rnd((H, V)), rnd((H, V))
    w_out = jnp.concatenate([wo_e, wo_g, wo_c], axis=0)      # (E_pad + 2H, V)
    w_out = jnp.pad(w_out, ((0, 0), (0, V_pad - V)))
    b_out = jnp.pad(rnd((1, V)), ((0, 0), (0, V_pad - V)))

    # TODO(synk): on v5e/v6e an int8-quantized w_out (per-tile scales) would
    # halve the projection weight stream again; not a drop-in on v7x (fp8 MXU).
    return {
        "emb_table": emb,
        "wh": wh.astype(dtype_w), "we": we.astype(dtype_w), "ba": ba, "v": v_row,
        "wih_e": wih_e.astype(dtype_w), "wih_c": wih_c.astype(dtype_w), "bih": bih,
        "whh": whh.astype(dtype_w), "bhh": bhh,
        "w_out": w_out.astype(dtype_w), "b_out": b_out,
    }


if __name__ == "__main__":
    # Small shapes standing in for the module's (E=300, H=1024, V=len(embedding)).
    # E and V are deliberately NOT multiples of 128 to exercise the padding path.
    B, L, H = 4, 16, 128
    E, V = 72, 250

    key = jax.random.PRNGKey(0)
    k_tok, k_hid, k_eo, k_par = jax.random.split(key, 4)

    tokens = jax.random.randint(k_tok, (B,), 0, V, dtype=jnp.int32)
    hidden = jax.random.normal(k_hid, (B, H), jnp.float32)
    e_output = jax.random.normal(k_eo, (B, L, H), jnp.float32)
    lens = jnp.array([L, L // 2, L - 3, 5], dtype=jnp.int32)
    mask = jnp.arange(L)[None, :] < lens[:, None]            # (B, L) bool

    params = make_params(k_par, E=E, H=H, V=V)

    # vocab_tile=128 exercises the parallel V-tiled projection grid
    # (V padded 250 -> 256 -> 2 grid steps).
    prediction, new_hidden = decoder_forward(tokens, hidden, e_output, mask,
                                             params, vocab_size=V, vocab_tile=128)
    jax.block_until_ready((prediction, new_hidden))
    assert prediction.shape == (B, V) and new_hidden.shape == (B, H)
    print("KERNEL_OK")
</pallas_src>

<mosaic_0001>
module attributes {stable_mosaic.version = 11 : i64} {
  func.func @attn_gru_kernel(%arg0: i32, %arg1: memref<4x128xf32, #tpu.memory_space<vmem>>, %arg2: memref<4x16x128xbf16, #tpu.memory_space<vmem>>, %arg3: memref<4x16xi32, #tpu.memory_space<vmem>>, %arg4: memref<4x128xf32, #tpu.memory_space<vmem>>, %arg5: memref<128x128xbf16, #tpu.memory_space<vmem>>, %arg6: memref<128x128xbf16, #tpu.memory_space<vmem>>, %arg7: memref<1x128xf32, #tpu.memory_space<vmem>>, %arg8: memref<1x128xf32, #tpu.memory_space<vmem>>, %arg9: memref<128x384xbf16, #tpu.memory_space<vmem>>, %arg10: memref<128x384xbf16, #tpu.memory_space<vmem>>, %arg11: memref<1x384xf32, #tpu.memory_space<vmem>>, %arg12: memref<128x384xbf16, #tpu.memory_space<vmem>>, %arg13: memref<1x384xf32, #tpu.memory_space<vmem>>, %arg14: memref<4x384xbf16, #tpu.memory_space<vmem>>, %arg15: memref<4x128xf32, #tpu.memory_space<vmem>>) attributes {dimension_semantics = [#tpu.dimension_semantics<arbitrary>], iteration_bounds = array<i64: 1>, scalar_prefetch = 0 : i64, scratch_operands = 0 : i64, tpu.core_type = #tpu.core_type<tc>, window_params = [{pipeline_mode = #tpu.pipeline_mode<synchronous>, transform_indices = @transform_0, window_bounds = array<i64: 4, 128>}, {pipeline_mode = #tpu.pipeline_mode<synchronous>, transform_indices = @transform_1, window_bounds = array<i64: 4, 16, 128>}, {pipeline_mode = #tpu.pipeline_mode<synchronous>, transform_indices = @transform_2, window_bounds = array<i64: 4, 16>}, {pipeline_mode = #tpu.pipeline_mode<synchronous>, transform_indices = @transform_3, window_bounds = array<i64: 4, 128>}, {pipeline_mode = #tpu.pipeline_mode<synchronous>, transform_indices = @transform_4, window_bounds = array<i64: 128, 128>}, {pipeline_mode = #tpu.pipeline_mode<synchronous>, transform_indices = @transform_5, window_bounds = array<i64: 128, 128>}, {pipeline_mode = #tpu.pipeline_mode<synchronous>, transform_indices = @transform_6, window_bounds = array<i64: 1, 128>}, {pipeline_mode = #tpu.pipeline_mode<synchronous>, transform_indices = @transform_7, window_bounds = array<i64: 1, 128>}, {pipeline_mode = #tpu.pipeline_mode<synchronous>, transform_indices = @transform_8, window_bounds = array<i64: 128, 384>}, {pipeline_mode = #tpu.pipeline_mode<synchronous>, transform_indices = @transform_9, window_bounds = array<i64: 128, 384>}, {pipeline_mode = #tpu.pipeline_mode<synchronous>, transform_indices = @transform_10, window_bounds = array<i64: 1, 384>}, {pipeline_mode = #tpu.pipeline_mode<synchronous>, transform_indices = @transform_11, window_bounds = array<i64: 128, 384>}, {pipeline_mode = #tpu.pipeline_mode<synchronous>, transform_indices = @transform_12, window_bounds = array<i64: 1, 384>}, {pipeline_mode = #tpu.pipeline_mode<synchronous>, transform_indices = @transform_13, window_bounds = array<i64: 4, 384>}, {pipeline_mode = #tpu.pipeline_mode<synchronous>, transform_indices = @transform_14, window_bounds = array<i64: 4, 128>}]} {
    %c0 = arith.constant 0 : index
    %c0_0 = arith.constant 0 : index
    %0 = vector.load %arg1[%c0, %c0_0] : memref<4x128xf32, #tpu.memory_space<vmem>>, vector<4x128xf32>
    %c0_1 = arith.constant 0 : index
    %c0_2 = arith.constant 0 : index
    %c0_3 = arith.constant 0 : index
    %1 = vector.load %arg2[%c0_1, %c0_2, %c0_3] : memref<4x16x128xbf16, #tpu.memory_space<vmem>>, vector<4x16x128xbf16>
    %2 = arith.truncf %0 : vector<4x128xf32> to vector<4x128xbf16>
    %c0_4 = arith.constant 0 : index
    %c0_5 = arith.constant 0 : index
    %3 = vector.load %arg5[%c0_4, %c0_5] : memref<128x128xbf16, #tpu.memory_space<vmem>>, vector<128x128xbf16>
    %cst = arith.constant dense<0.000000e+00> : vector<4x128xf32>
    %4 = tpu.matmul %2, %3, %cst {dimension_numbers = #tpu.dot_dimension_numbers<[1], [0], [0], [1], [0, 0, 1, 1], [], []>} : vector<4x128xbf16>, vector<128x128xbf16>, vector<4x128xf32> -> vector<4x128xf32>
    %5 = vector.shape_cast %1 : vector<4x16x128xbf16> to vector<64x128xbf16>
    %c0_6 = arith.constant 0 : index
    %c0_7 = arith.constant 0 : index
    %6 = vector.load %arg6[%c0_6, %c0_7] : memref<128x128xbf16, #tpu.memory_space<vmem>>, vector<128x128xbf16>
    %cst_8 = arith.constant dense<0.000000e+00> : vector<64x128xf32>
    %7 = tpu.matmul %5, %6, %cst_8 {dimension_numbers = #tpu.dot_dimension_numbers<[1], [0], [0], [1], [0, 0, 1, 1], [], []>} : vector<64x128xbf16>, vector<128x128xbf16>, vector<64x128xf32> -> vector<64x128xf32>
    %8 = vector.shape_cast %4 : vector<4x128xf32> to vector<4x1x128xf32>
    %9 = vector.shape_cast %7 : vector<64x128xf32> to vector<4x16x128xf32>
    %10 = vector.broadcast %8 : vector<4x1x128xf32> to vector<4x16x128xf32>
    %11 = arith.addf %10, %9 : vector<4x16x128xf32>
    %c0_9 = arith.constant 0 : index
    %c0_10 = arith.constant 0 : index
    %12 = vector.load %arg7[%c0_9, %c0_10] : memref<1x128xf32, #tpu.memory_space<vmem>>, vector<1x128xf32>
    %13 = vector.shape_cast %12 : vector<1x128xf32> to vector<1x1x128xf32>
    %14 = vector.broadcast %13 : vector<1x1x128xf32> to vector<4x16x128xf32>
    %15 = arith.addf %11, %14 : vector<4x16x128xf32>
    %16 = math.tanh %15 : vector<4x16x128xf32>
    %c0_11 = arith.constant 0 : index
    %c0_12 = arith.constant 0 : index
    %17 = vector.load %arg8[%c0_11, %c0_12] : memref<1x128xf32, #tpu.memory_space<vmem>>, vector<1x128xf32>
    %18 = vector.shape_cast %17 : vector<1x128xf32> to vector<1x1x128xf32>
    %19 = vector.broadcast %18 : vector<1x1x128xf32> to vector<4x16x128xf32>
    %20 = arith.mulf %16, %19 : vector<4x16x128xf32>
    %cst_13 = arith.constant dense<0.000000e+00> : vector<4x16xf32>
    %21 = vector.multi_reduction <add>, %20, %cst_13 [2] : vector<4x16x128xf32> to vector<4x16xf32>
    %c0_14 = arith.constant 0 : index
    %c0_15 = arith.constant 0 : index
    %22 = vector.load %arg3[%c0_14, %c0_15] : memref<4x16xi32, #tpu.memory_space<vmem>>, vector<4x16xi32>
    %c0_i32 = arith.constant 0 : i32
    %23 = vector.broadcast %c0_i32 : i32 to vector<4x16xi32>
    %24 = arith.cmpi ne, %22, %23 : vector<4x16xi32>
    %cst_16 = arith.constant -1.000000e+10 : f32
    %25 = vector.broadcast %cst_16 : f32 to vector<4x16xf32>
    %26 = arith.select %24, %21, %25 : vector<4x16xi1>, vector<4x16xf32>
    %cst_17 = arith.constant dense<0xFF800000> : vector<4xf32>
    %27 = vector.multi_reduction <maximumf>, %26, %cst_17 [1] : vector<4x16xf32> to vector<4xf32>
    %28 = vector.shape_cast %27 : vector<4xf32> to vector<4x1xf32>
    %29 = vector.broadcast %28 : vector<4x1xf32> to vector<4x16xf32>
    %30 = arith.subf %26, %29 : vector<4x16xf32>
    %31 = math.exp %30 : vector<4x16xf32>
    %cst_18 = arith.constant dense<0.000000e+00> : vector<4xf32>
    %32 = vector.multi_reduction <add>, %31, %cst_18 [1] : vector<4x16xf32> to vector<4xf32>
    %33 = vector.shape_cast %32 : vector<4xf32> to vector<4x1xf32>
    %34 = tpu.reciprocal %33 {approx = true} : vector<4x1xf32> -> vector<4x1xf32>
    %35 = vector.broadcast %34 : vector<4x1xf32> to vector<4x16xf32>
    %36 = arith.mulf %31, %35 : vector<4x16xf32>
    %37 = arith.extf %1 : vector<4x16x128xbf16> to vector<4x16x128xf32>
    %38 = vector.shape_cast %36 : vector<4x16xf32> to vector<4x16x1xf32>
    %39 = vector.broadcast %38 : vector<4x16x1xf32> to vector<4x16x128xf32>
    %40 = arith.mulf %37, %39 : vector<4x16x128xf32>
    %cst_19 = arith.constant dense<0.000000e+00> : vector<4x128xf32>
    %41 = vector.multi_reduction <add>, %40, %cst_19 [1] : vector<4x16x128xf32> to vector<4x128xf32>
    %c0_20 = arith.constant 0 : index
    %c0_21 = arith.constant 0 : index
    %42 = vector.load %arg4[%c0_20, %c0_21] : memref<4x128xf32, #tpu.memory_space<vmem>>, vector<4x128xf32>
    %43 = arith.truncf %42 : vector<4x128xf32> to vector<4x128xbf16>
    %c0_22 = arith.constant 0 : index
    %c0_23 = arith.constant 0 : index
    %44 = vector.load %arg9[%c0_22, %c0_23] : memref<128x384xbf16, #tpu.memory_space<vmem>>, vector<128x384xbf16>
    %cst_24 = arith.constant dense<0.000000e+00> : vector<4x384xf32>
    %45 = tpu.matmul %43, %44, %cst_24 {dimension_numbers = #tpu.dot_dimension_numbers<[1], [0], [0], [1], [0, 0, 1, 1], [], []>} : vector<4x128xbf16>, vector<128x384xbf16>, vector<4x384xf32> -> vector<4x384xf32>
    %46 = arith.truncf %41 : vector<4x128xf32> to vector<4x128xbf16>
    %c0_25 = arith.constant 0 : index
    %c0_26 = arith.constant 0 : index
    %47 = vector.load %arg10[%c0_25, %c0_26] : memref<128x384xbf16, #tpu.memory_space<vmem>>, vector<128x384xbf16>
    %cst_27 = arith.constant dense<0.000000e+00> : vector<4x384xf32>
    %48 = tpu.matmul %46, %47, %cst_27 {dimension_numbers = #tpu.dot_dimension_numbers<[1], [0], [0], [1], [0, 0, 1, 1], [], []>} : vector<4x128xbf16>, vector<128x384xbf16>, vector<4x384xf32> -> vector<4x384xf32>
    %49 = arith.addf %45, %48 : vector<4x384xf32>
    %c0_28 = arith.constant 0 : index
    %c0_29 = arith.constant 0 : index
    %50 = vector.load %arg11[%c0_28, %c0_29] : memref<1x384xf32, #tpu.memory_space<vmem>>, vector<1x384xf32>
    %51 = vector.broadcast %50 : vector<1x384xf32> to vector<4x384xf32>
    %52 = arith.addf %49, %51 : vector<4x384xf32>
    %53 = arith.truncf %0 : vector<4x128xf32> to vector<4x128xbf16>
    %c0_30 = arith.constant 0 : index
    %c0_31 = arith.constant 0 : index
    %54 = vector.load %arg12[%c0_30, %c0_31] : memref<128x384xbf16, #tpu.memory_space<vmem>>, vector<128x384xbf16>
    %cst_32 = arith.constant dense<0.000000e+00> : vector<4x384xf32>
    %55 = tpu.matmul %53, %54, %cst_32 {dimension_numbers = #tpu.dot_dimension_numbers<[1], [0], [0], [1], [0, 0, 1, 1], [], []>} : vector<4x128xbf16>, vector<128x384xbf16>, vector<4x384xf32> -> vector<4x384xf32>
    %c0_33 = arith.constant 0 : index
    %c0_34 = arith.constant 0 : index
    %56 = vector.load %arg13[%c0_33, %c0_34] : memref<1x384xf32, #tpu.memory_space<vmem>>, vector<1x384xf32>
    %57 = vector.broadcast %56 : vector<1x384xf32> to vector<4x384xf32>
    %58 = arith.addf %55, %57 : vector<4x384xf32>
    %59 = vector.extract_strided_slice %52 {offsets = [0, 0], sizes = [4, 128], strides = [1, 1]} : vector<4x384xf32> to vector<4x128xf32>
    %60 = vector.extract_strided_slice %52 {offsets = [0, 128], sizes = [4, 128], strides = [1, 1]} : vector<4x384xf32> to vector<4x128xf32>
    %61 = vector.extract_strided_slice %52 {offsets = [0, 256], sizes = [4, 128], strides = [1, 1]} : vector<4x384xf32> to vector<4x128xf32>
    %62 = vector.extract_strided_slice %58 {offsets = [0, 0], sizes = [4, 128], strides = [1, 1]} : vector<4x384xf32> to vector<4x128xf32>
    %63 = vector.extract_strided_slice %58 {offsets = [0, 128], sizes = [4, 128], strides = [1, 1]} : vector<4x384xf32> to vector<4x128xf32>
    %64 = vector.extract_strided_slice %58 {offsets = [0, 256], sizes = [4, 128], strides = [1, 1]} : vector<4x384xf32> to vector<4x128xf32>
    %65 = arith.addf %59, %62 : vector<4x128xf32>
    %66 = arith.negf %65 : vector<4x128xf32>
    %67 = math.exp %66 : vector<4x128xf32>
    %cst_35 = arith.constant 1.000000e+00 : f32
    %68 = vector.broadcast %cst_35 : f32 to vector<4x128xf32>
    %69 = arith.addf %68, %67 : vector<4x128xf32>
    %70 = arith.divf %68, %69 : vector<4x128xf32>
    %71 = arith.addf %60, %63 : vector<4x128xf32>
    %72 = arith.negf %71 : vector<4x128xf32>
    %73 = math.exp %72 : vector<4x128xf32>
    %cst_36 = arith.constant 1.000000e+00 : f32
    %74 = vector.broadcast %cst_36 : f32 to vector<4x128xf32>
    %75 = arith.addf %74, %73 : vector<4x128xf32>
    %76 = arith.divf %74, %75 : vector<4x128xf32>
    %77 = arith.mulf %70, %64 : vector<4x128xf32>
    %78 = arith.addf %61, %77 : vector<4x128xf32>
    %79 = math.tanh %78 : vector<4x128xf32>
    %cst_37 = arith.constant 1.000000e+00 : f32
    %80 = vector.broadcast %cst_37 : f32 to vector<4x128xf32>
    %81 = arith.subf %80, %76 : vector<4x128xf32>
    %82 = arith.mulf %81, %79 : vector<4x128xf32>
    %83 = arith.mulf %76, %0 : vector<4x128xf32>
    %84 = arith.addf %82, %83 : vector<4x128xf32>
    %c0_38 = arith.constant 0 : index
    %c0_39 = arith.constant 0 : index
    %85 = vector.load %arg15[%c0_38, %c0_39] : memref<4x128xf32, #tpu.memory_space<vmem>>, vector<4x128xf32>
    tpu.vector_store %arg15[%c0_38, %c0_39], %84 {strides = array<i32>} : memref<4x128xf32, #tpu.memory_space<vmem>>, vector<4x128xf32>,
    %86 = arith.truncf %42 : vector<4x128xf32> to vector<4x128xbf16>
    %c0_40 = arith.constant 0 : index
    %c0_41 = arith.constant 0 : index
    %87 = vector.load %arg14[%c0_40, %c0_41] : memref<4x384xbf16, #tpu.memory_space<vmem>>, vector<4x128xbf16>
    tpu.vector_store %arg14[%c0_40, %c0_41], %86 {strides = array<i32>} : memref<4x384xbf16, #tpu.memory_space<vmem>>, vector<4x128xbf16>,
    %88 = arith.truncf %84 : vector<4x128xf32> to vector<4x128xbf16>
    %c0_42 = arith.constant 0 : index
    %c128 = arith.constant 128 : index
    %89 = vector.load %arg14[%c0_42, %c128] : memref<4x384xbf16, #tpu.memory_space<vmem>>, vector<4x128xbf16>
    tpu.vector_store %arg14[%c0_42, %c128], %88 {strides = array<i32>} : memref<4x384xbf16, #tpu.memory_space<vmem>>, vector<4x128xbf16>,
    %90 = arith.truncf %41 : vector<4x128xf32> to vector<4x128xbf16>
    %c0_43 = arith.constant 0 : index
    %c256 = arith.constant 256 : index
    %91 = vector.load %arg14[%c0_43, %c256] : memref<4x384xbf16, #tpu.memory_space<vmem>>, vector<4x128xbf16>
    tpu.vector_store %arg14[%c0_43, %c256], %90 {strides = array<i32>} : memref<4x384xbf16, #tpu.memory_space<vmem>>, vector<4x128xbf16>,
    return
  }
  func.func @transform_0(%arg0: i32) -> (i32, i32) {
    %c0_i32 = arith.constant 0 : i32
    %c0_i32_0 = arith.constant 0 : i32
    %c0_i32_1 = arith.constant 0 : i32
    return %c0_i32, %c0_i32_0 : i32, i32
  }
  func.func @transform_1(%arg0: i32) -> (i32, i32, i32) {
    %c0_i32 = arith.constant 0 : i32
    %c0_i32_0 = arith.constant 0 : i32
    %c0_i32_1 = arith.constant 0 : i32
    %c0_i32_2 = arith.constant 0 : i32
    return %c0_i32, %c0_i32_0, %c0_i32_1 : i32, i32, i32
  }
  func.func @transform_2(%arg0: i32) -> (i32, i32) {
    %c0_i32 = arith.constant 0 : i32
    %c0_i32_0 = arith.constant 0 : i32
    %c0_i32_1 = arith.constant 0 : i32
    return %c0_i32, %c0_i32_0 : i32, i32
  }
  func.func @transform_3(%arg0: i32) -> (i32, i32) {
    %c0_i32 = arith.constant 0 : i32
    %c0_i32_0 = arith.constant 0 : i32
    %c0_i32_1 = arith.constant 0 : i32
    return %c0_i32, %c0_i32_0 : i32, i32
  }
  func.func @transform_4(%arg0: i32) -> (i32, i32) {
    %c0_i32 = arith.constant 0 : i32
    %c0_i32_0 = arith.constant 0 : i32
    %c0_i32_1 = arith.constant 0 : i32
    return %c0_i32, %c0_i32_0 : i32, i32
  }
  func.func @transform_5(%arg0: i32) -> (i32, i32) {
    %c0_i32 = arith.constant 0 : i32
    %c0_i32_0 = arith.constant 0 : i32
    %c0_i32_1 = arith.constant 0 : i32
    return %c0_i32, %c0_i32_0 : i32, i32
  }
  func.func @transform_6(%arg0: i32) -> (i32, i32) {
    %c0_i32 = arith.constant 0 : i32
    %c0_i32_0 = arith.constant 0 : i32
    %c0_i32_1 = arith.constant 0 : i32
    return %c0_i32, %c0_i32_0 : i32, i32
  }
  func.func @transform_7(%arg0: i32) -> (i32, i32) {
    %c0_i32 = arith.constant 0 : i32
    %c0_i32_0 = arith.constant 0 : i32
    %c0_i32_1 = arith.constant 0 : i32
    return %c0_i32, %c0_i32_0 : i32, i32
  }
  func.func @transform_8(%arg0: i32) -> (i32, i32) {
    %c0_i32 = arith.constant 0 : i32
    %c0_i32_0 = arith.constant 0 : i32
    %c0_i32_1 = arith.constant 0 : i32
    return %c0_i32, %c0_i32_0 : i32, i32
  }
  func.func @transform_9(%arg0: i32) -> (i32, i32) {
    %c0_i32 = arith.constant 0 : i32
    %c0_i32_0 = arith.constant 0 : i32
    %c0_i32_1 = arith.constant 0 : i32
    return %c0_i32, %c0_i32_0 : i32, i32
  }
  func.func @transform_10(%arg0: i32) -> (i32, i32) {
    %c0_i32 = arith.constant 0 : i32
    %c0_i32_0 = arith.constant 0 : i32
    %c0_i32_1 = arith.constant 0 : i32
    return %c0_i32, %c0_i32_0 : i32, i32
  }
  func.func @transform_11(%arg0: i32) -> (i32, i32) {
    %c0_i32 = arith.constant 0 : i32
    %c0_i32_0 = arith.constant 0 : i32
    %c0_i32_1 = arith.constant 0 : i32
    return %c0_i32, %c0_i32_0 : i32, i32
  }
  func.func @transform_12(%arg0: i32) -> (i32, i32) {
    %c0_i32 = arith.constant 0 : i32
    %c0_i32_0 = arith.constant 0 : i32
    %c0_i32_1 = arith.constant 0 : i32
    return %c0_i32, %c0_i32_0 : i32, i32
  }
  func.func @transform_13(%arg0: i32) -> (i32, i32) {
    %c0_i32 = arith.constant 0 : i32
    %c0_i32_0 = arith.constant 0 : i32
    %c0_i32_1 = arith.constant 0 : i32
    return %c0_i32, %c0_i32_0 : i32, i32
  }
  func.func @transform_14(%arg0: i32) -> (i32, i32) {
    %c0_i32 = arith.constant 0 : i32
    %c0_i32_0 = arith.constant 0 : i32
    %c0_i32_1 = arith.constant 0 : i32
    return %c0_i32, %c0_i32_0 : i32, i32
  }
}

</mosaic_0001>

<bundles_post_ra>
// kernel: tpu_custom_call.1
= control target key start
LH: loop header
LB: loop body
LE: loop exit
PB: predicated region body
PF: predicated region fallthrough
CT: control target
= control target key end

     0   :  { %20 = vsyncpa [#allocation3], 0  ;;  %s2863_s0 = inlined_call_operand.hbm [shape: f32[4,128], index: 0, kind: input, shape index: {}]   ;;  %s2864_s1 = inlined_call_operand.hbm [shape: bf16[4,16,128], index: 1, kind: input, shape index: {}]   ;;  %s2865_s2 = inlined_call_operand.hbm [shape: s32[4,16], index: 2, kind: input, shape index: {}]   ;;  %s2866_s3 = inlined_call_operand.hbm [shape: f32[4,128], index: 3, kind: input, shape index: {}]   ;;  %s2867_s4 = inlined_call_operand.hbm [shape: bf16[128,128], index: 4, kind: input, shape index: {}]   ;;  %s2868_s5 = inlined_call_operand.hbm [shape: bf16[128,128], index: 5, kind: input, shape index: {}]   ;;  %s2869_s6 = inlined_call_operand.hbm [shape: f32[1,128], index: 6, kind: input, shape index: {}]   ;;  %s2870_s7 = inlined_call_operand.hbm [shape: f32[1,128], index: 7, kind: input, shape index: {}]   ;;  %s2871_s8 = inlined_call_operand.hbm [shape: bf16[128,384], index: 8, kind: input, shape index: {}]   ;;  %s2872_s9 = inlined_call_operand.hbm [shape: bf16[128,384], index: 9, kind: input, shape index: {}]   ;;  %s2873_s10 = inlined_call_operand.hbm [shape: f32[1,384], index: 10, kind: input, shape index: {}]   ;;  %s2874_s11 = inlined_call_operand.hbm [shape: bf16[128,384], index: 11, kind: input, shape index: {}]   ;;  %s2875_s12 = inlined_call_operand.hbm [shape: f32[1,384], index: 12, kind: input, shape index: {}]   ;;  %s2876_s13 = inlined_call_operand.hbm [shape: bf16[4,384], index: 13, kind: output, shape index: {0}]   ;;  %s2877_s14 = inlined_call_operand.hbm [shape: f32[4,128], index: 14, kind: output, shape index: {1}]  }
   0x1   :  { %21 = vsyncpa [#allocation6], 0 }
   0x2   :  { %22 = vsyncpa [#allocation9], 0 }
   0x3   :  { %23 = vsyncpa [#allocation12], 0 }
   0x4   :  { %24 = vsyncpa [#allocation15], 0 }
   0x5   :  { %25 = vsyncpa [#allocation18], 0 }
   0x6   :  { %26 = vsyncpa [#allocation21], 0 }
   0x7   :  { %27 = vsyncpa [#allocation4], 0 }
   0x8   :  { %28 = vsyncpa [#allocation25], 0  ;;  %s2442_s29 = smov [#allocation5]   ;;  %s2094_s17 = scalar_lea.hbm %s2864_s1, 512 }
   0x9   :  { %s44_s30 = sshll.u32 %s2442_s29, 4  ;;  %p2095_p0 = scmp.ne.s32.totalorder %s2864_s1, %s2094_s17  ;;  %s45_s30 = int_to_ptr.vmem [resolvable:$true] %s44_s30 }
   0xa   :  { %p2098_p1 = scmp.lt.u32.totalorder %s2094_s17, %s2864_s1 }
   0xc   :  { %p2100_p2 = pnand %p2098_p1, %p2095_p0 }
   0xe   :  { %2103 = shalt.err (!%p2100_p2)
}
   0xf   :  { %s2104_s22 = scalar_lea.vmem %s45_s30, 512  ;;  %p2109_p4 = scmp.lt.s32.totalorder %s45_s30, %s45_s30 }
  0x10   :  { %p2105_p3 = scmp.ne.s32.totalorder %s45_s30, %s2104_s22  ;;  %p2110_p5 = scmp.lt.s32.totalorder %s2104_s22, %s2104_s22 }
  0x12   :  { %p2111_p6 = por %p2110_p5, %p2109_p4 }
  0x14   :  { %p2112_p7 = pnand %p2111_p6, %p2105_p3 }
  0x16   :  { %2115 = shalt.err (!%p2112_p7)
}
  0x17   :  { %s2443_s23 = smov 64   ;;  %s2444_s24 = smov 4  }
  0x18   :  { %50 = dma.hbm_to_vmem [thread:$0]  %s2864_s1, 512, %s45_s30, [#allocation6], %s2443_s23, %s2443_s23, %s2444_s24  }
  0x19   :  { %s2445_s27 = smov [#allocation8]   ;;  %s2446_s29 = smov [#allocation11]  }
  0x1a   :  { %s67_s28 = sshll.u32 %s2445_s27, 4  ;;  %s88_s15 = sshll.u32 %s2446_s29, 4  ;;  %s68_s28 = int_to_ptr.vmem [resolvable:$true] %s67_s28  ;;  %s89_s15 = int_to_ptr.vmem [resolvable:$true] %s88_s15 }
  0x1b   :  { %s2116_s18 = scalar_lea.hbm %s2866_s3, 64 }
  0x1c   :  { %p2117_p8 = scmp.ne.s32.totalorder %s2866_s3, %s2116_s18  ;;  %p2120_p9 = scmp.lt.u32.totalorder %s2116_s18, %s2866_s3 }
  0x1e   :  { %p2122_p10 = pnand %p2120_p9, %p2117_p8 }
  0x20   :  { %2125 = shalt.err (!%p2122_p10)
}
  0x21   :  { %s2126_s1 = scalar_lea.vmem %s68_s28, 64  ;;  %p2131_p12 = scmp.lt.s32.totalorder %s68_s28, %s68_s28 }
  0x22   :  { %p2127_p11 = scmp.ne.s32.totalorder %s68_s28, %s2126_s1  ;;  %p2132_p13 = scmp.lt.s32.totalorder %s2126_s1, %s2126_s1 }
  0x24   :  { %p2133_p0 = por %p2132_p13, %p2131_p12 }
  0x26   :  { %p2134_p1 = pnand %p2133_p0, %p2127_p11 }
  0x28   :  { %2137 = shalt.err (!%p2134_p1)
}
  0x29   :  { %70 = dma.hbm_to_vmem [thread:$0]  %s2866_s3, 64, %s68_s28, [#allocation9]  }
  0x2a   :  { %s2138_s29 = scalar_lea.hbm %s2868_s5, 1024 }
  0x2b   :  { %p2139_p2 = scmp.ne.s32.totalorder %s2868_s5, %s2138_s29  ;;  %p2142_p3 = scmp.lt.u32.totalorder %s2138_s29, %s2868_s5 }
  0x2d   :  { %p2144_p4 = pnand %p2142_p3, %p2139_p2 }
  0x2f   :  { %2147 = shalt.err (!%p2144_p4)
}
  0x30   :  { %s2148_s20 = scalar_lea.vmem %s89_s15, 1024  ;;  %p2153_p6 = scmp.lt.s32.totalorder %s89_s15, %s89_s15 }
  0x31   :  { %p2149_p5 = scmp.ne.s32.totalorder %s89_s15, %s2148_s20  ;;  %p2154_p7 = scmp.lt.s32.totalorder %s2148_s20, %s2148_s20 }
  0x33   :  { %p2155_p8 = por %p2154_p7, %p2153_p6 }
  0x35   :  { %p2156_p9 = pnand %p2155_p8, %p2149_p5 }
  0x37   :  { %2159 = shalt.err (!%p2156_p9)
}
  0x38   :  { %94 = dma.hbm_to_vmem [thread:$0]  %s2868_s5, 1024, %s89_s15, [#allocation12], %s2443_s23, %s2443_s23, %s2444_s24  }
  0x39   :  { %s2447_s21 = smov [#allocation14]   ;;  %s2160_s25 = scalar_lea.hbm %s2870_s7, 16 }
  0x3a   :  { %s111_s22 = sshll.u32 %s2447_s21, 4  ;;  %p2161_p10 = scmp.ne.s32.totalorder %s2870_s7, %s2160_s25  ;;  %s112_s22 = int_to_ptr.vmem [resolvable:$true] %s111_s22 }
  0x3b   :  { %p2164_p11 = scmp.lt.u32.totalorder %s2160_s25, %s2870_s7 }
  0x3d   :  { %p2166_p12 = pnand %p2164_p11, %p2161_p10 }
  0x3f   :  { %2169 = shalt.err (!%p2166_p12)
}
  0x40   :  { %s2170_s17 = scalar_lea.vmem %s112_s22, 16  ;;  %s2174_s5 = scalar_lea.vmem %s112_s22, 32 }
  0x41   :  { %p2171_p13 = scmp.ne.s32.totalorder %s112_s22, %s2170_s17  ;;  %p2175_p0 = scmp.lt.s32.totalorder %s112_s22, %s112_s22 }
  0x42   :  { %p2176_p1 = scmp.lt.s32.totalorder %s2174_s5, %s2170_s17 }
  0x44   :  { %p2177_p2 = por %p2176_p1, %p2175_p0 }
  0x46   :  { %p2178_p3 = pnand %p2177_p2, %p2171_p13 }
  0x48   :  { %2181 = shalt.err (!%p2178_p3)
}
  0x49   :  { %114 = dma.hbm_to_vmem [thread:$0]  %s2870_s7, 16, %s112_s22, [#allocation15]  }
  0x4a   :  { %s2448_s19 = smov [#allocation17]   ;;  %s2449_s3 = smov [#allocation20]  }
  0x4b   :  { %s132_s20 = sshll.u32 %s2448_s19, 4  ;;  %s154_s28 = sshll.u32 %s2449_s3, 4  ;;  %s133_s20 = int_to_ptr.vmem [resolvable:$true] %s132_s20  ;;  %s2595_s28 = int_to_ptr.vmem [resolvable:$true] %s154_s28 }
  0x4c   :  { %s2182_s30 = scalar_lea.hbm %s2872_s9, 3072 }
  0x4d   :  { %p2183_p4 = scmp.ne.s32.totalorder %s2872_s9, %s2182_s30  ;;  %p2186_p5 = scmp.lt.u32.totalorder %s2182_s30, %s2872_s9 }
  0x4f   :  { %p2188_p6 = pnand %p2186_p5, %p2183_p4 }
  0x51   :  { %2191 = shalt.err (!%p2188_p6)
}
  0x52   :  { %s2192_s7 = scalar_lea.vmem %s133_s20, 3072  ;;  %p2197_p8 = scmp.lt.s32.totalorder %s133_s20, %s133_s20 }
  0x53   :  { %p2193_p7 = scmp.ne.s32.totalorder %s133_s20, %s2192_s7  ;;  %p2198_p9 = scmp.lt.s32.totalorder %s2192_s7, %s2192_s7 }
  0x55   :  { %p2199_p10 = por %p2198_p9, %p2197_p8 }
  0x57   :  { %p2200_p11 = pnand %p2199_p10, %p2193_p7 }
  0x59   :  { %2203 = shalt.err (!%p2200_p11)
}
  0x5a   :  { %s2450_s22 = smov 192   ;;  %s2451_s16 = smov 12  }
  0x5b   :  { %138 = dma.hbm_to_vmem [thread:$0]  %s2872_s9, 3072, %s133_s20, [#allocation18], %s2450_s22, %s2450_s22, %s2451_s16  }
  0x5c   :  { %s2204_s19 = scalar_lea.hbm %s2874_s11, 3072 }
  0x5d   :  { %p2205_p12 = scmp.ne.s32.totalorder %s2874_s11, %s2204_s19  ;;  %p2208_p13 = scmp.lt.u32.totalorder %s2204_s19, %s2874_s11 }
  0x5f   :  { %p2210_p0 = pnand %p2208_p13, %p2205_p12 }
  0x61   :  { %2213 = shalt.err (!%p2210_p0)
}
  0x62   :  { %s2214_s25 = scalar_lea.vmem %s2595_s28, 3072  ;;  %p2219_p2 = scmp.lt.s32.totalorder %s2595_s28, %s2595_s28 }
  0x63   :  { %p2215_p1 = scmp.ne.s32.totalorder %s2595_s28, %s2214_s25  ;;  %p2220_p3 = scmp.lt.s32.totalorder %s2214_s25, %s2214_s25 }
  0x65   :  { %p2221_p4 = por %p2220_p3, %p2219_p2 }
  0x67   :  { %p2222_p5 = pnand %p2221_p4, %p2215_p1 }
  0x69   :  { %2225 = shalt.err (!%p2222_p5)
}
  0x6a   :  { %160 = dma.hbm_to_vmem [thread:$0]  %s2874_s11, 3072, %s2595_s28, [#allocation21], %s2450_s22, %s2450_s22, %s2451_s16  }
  0x6b   :  { %s2452_s26 = smov [#allocation2]   ;;  %s2453_s29 = smov [#allocation7]  }
  0x6c   :  { %s35_s27 = sshll.u32 %s2452_s26, 4  ;;  %s57_s7 = sshll.u32 %s2453_s29, 4  ;;  %s36_s27 = int_to_ptr.vmem [resolvable:$true] %s35_s27  ;;  %s58_s7 = int_to_ptr.vmem [resolvable:$true] %s57_s7 }
  0x6d   :  { %s2226_s15 = scalar_lea.hbm %s2863_s0, 64 }
  0x6e   :  { %p2227_p6 = scmp.ne.s32.totalorder %s2863_s0, %s2226_s15  ;;  %p2230_p7 = scmp.lt.u32.totalorder %s2226_s15, %s2863_s0 }
  0x70   :  { %p2232_p8 = pnand %p2230_p7, %p2227_p6 }
  0x72   :  { %2235 = shalt.err (!%p2232_p8)
}
  0x73   :  { %s2236_s11 = scalar_lea.vmem %s36_s27, 64  ;;  %p2241_p10 = scmp.lt.s32.totalorder %s36_s27, %s36_s27 }
  0x74   :  { %p2237_p9 = scmp.ne.s32.totalorder %s36_s27, %s2236_s11  ;;  %p2242_p11 = scmp.lt.s32.totalorder %s2236_s11, %s2236_s11 }
  0x76   :  { %p2243_p12 = por %p2242_p11, %p2241_p10 }
  0x78   :  { %p2244_p13 = pnand %p2243_p12, %p2237_p9 }
  0x7a   :  { %2247 = shalt.err (!%p2244_p13)
}
  0x7b   :  { %38 = dma.hbm_to_vmem [thread:$0]  %s2863_s0, 64, %s36_s27, [#allocation3]  }
  0x7c   :  { %s2248_s9 = scalar_lea.hbm %s2865_s2, 64 }
  0x7d   :  { %p2249_p0 = scmp.ne.s32.totalorder %s2865_s2, %s2248_s9  ;;  %p2252_p1 = scmp.lt.u32.totalorder %s2248_s9, %s2865_s2 }
  0x7f   :  { %p2254_p2 = pnand %p2252_p1, %p2249_p0 }
  0x81   :  { %2257 = shalt.err (!%p2254_p2)
}
  0x82   :  { %s2258_s5 = scalar_lea.vmem %s58_s7, 64  ;;  %p2263_p4 = scmp.lt.s32.totalorder %s58_s7, %s58_s7 }
  0x83   :  { %p2259_p3 = scmp.ne.s32.totalorder %s58_s7, %s2258_s5  ;;  %p2264_p5 = scmp.lt.s32.totalorder %s2258_s5, %s2258_s5 }
  0x85   :  { %p2265_p6 = por %p2264_p5, %p2263_p4 }
  0x87   :  { %p2266_p7 = pnand %p2265_p6, %p2259_p3 }
  0x89   :  { %2269 = shalt.err (!%p2266_p7)
}
  0x8a   :  { %60 = dma.hbm_to_vmem [thread:$0]  %s2865_s2, 64, %s58_s7, [#allocation6]  }
  0x8b   :  { %s2454_s15 = smov [#allocation10]   ;;  %s2455_s19 = smov [#allocation13]  }
  0x8c   :  { %s76_s18 = sshll.u32 %s2454_s15, 4  ;;  %s101_s3 = sshll.u32 %s2455_s19, 4  ;;  %s77_s18 = int_to_ptr.vmem [resolvable:$true] %s76_s18  ;;  %s102_s3 = int_to_ptr.vmem [resolvable:$true] %s101_s3 }
  0x8d   :  { %s2270_s28 = scalar_lea.hbm %s2867_s4, 1024 }
  0x8e   :  { %p2271_p8 = scmp.ne.s32.totalorder %s2867_s4, %s2270_s28  ;;  %p2274_p9 = scmp.lt.u32.totalorder %s2270_s28, %s2867_s4 }
  0x90   :  { %p2276_p10 = pnand %p2274_p9, %p2271_p8 }
  0x92   :  { %2279 = shalt.err (!%p2276_p10)
}
  0x93   :  { %s2280_s2 = scalar_lea.vmem %s77_s18, 1024  ;;  %p2285_p12 = scmp.lt.s32.totalorder %s77_s18, %s77_s18 }
  0x94   :  { %p2281_p11 = scmp.ne.s32.totalorder %s77_s18, %s2280_s2  ;;  %p2286_p13 = scmp.lt.s32.totalorder %s2280_s2, %s2280_s2 }
  0x96   :  { %p2287_p0 = por %p2286_p13, %p2285_p12 }
  0x98   :  { %p2288_p1 = pnand %p2287_p0, %p2281_p11 }
  0x9a   :  { %2291 = shalt.err (!%p2288_p1)
}
  0x9b   :  { %82 = dma.hbm_to_vmem [thread:$0]  %s2867_s4, 1024, %s77_s18, [#allocation9], %s2443_s23, %s2443_s23, %s2444_s24  }
  0x9c   :  { %s2292_s17 = scalar_lea.hbm %s2869_s6, 16 }
  0x9d   :  { %p2293_p2 = scmp.ne.s32.totalorder %s2869_s6, %s2292_s17  ;;  %p2296_p3 = scmp.lt.u32.totalorder %s2292_s17, %s2869_s6 }
  0x9f   :  { %p2298_p4 = pnand %p2296_p3, %p2293_p2 }
  0xa1   :  { %2301 = shalt.err (!%p2298_p4)
}
  0xa2   :  { %s2302_s19 = scalar_lea.vmem %s102_s3, 16  ;;  %s2306_s21 = scalar_lea.vmem %s102_s3, 32 }
  0xa3   :  { %p2303_p5 = scmp.ne.s32.totalorder %s102_s3, %s2302_s19  ;;  %p2307_p6 = scmp.lt.s32.totalorder %s102_s3, %s102_s3 }
  0xa4   :  { %p2308_p7 = scmp.lt.s32.totalorder %s2306_s21, %s2302_s19 }
  0xa6   :  { %p2309_p8 = por %p2308_p7, %p2307_p6 }
  0xa8   :  { %p2310_p9 = pnand %p2309_p8, %p2303_p5 }
  0xaa   :  { %2313 = shalt.err (!%p2310_p9)
}
  0xab   :  { %104 = dma.hbm_to_vmem [thread:$0]  %s2869_s6, 16, %s102_s3, [#allocation12]  }
  0xac   :  { %s2456_s24 = smov [#allocation16]   ;;  %s2457_s11 = smov [#allocation19]  }
  0xad   :  { %s120_s18 = sshll.u32 %s2456_s24, 4  ;;  %s145_s28 = sshll.u32 %s2457_s11, 4  ;;  %s121_s18 = int_to_ptr.vmem [resolvable:$true] %s120_s18  ;;  %s146_s28 = int_to_ptr.vmem [resolvable:$true] %s145_s28 }
  0xae   :  { %s2314_s25 = scalar_lea.hbm %s2871_s8, 3072 }
  0xaf   :  { %p2315_p10 = scmp.ne.s32.totalorder %s2871_s8, %s2314_s25  ;;  %p2318_p11 = scmp.lt.u32.totalorder %s2314_s25, %s2871_s8 }
  0xb1   :  { %p2320_p12 = pnand %p2318_p11, %p2315_p10 }
  0xb3   :  { %2323 = shalt.err (!%p2320_p12)
}
  0xb4   :  { %s2324_s6 = scalar_lea.vmem %s121_s18, 3072  ;;  %p2329_p0 = scmp.lt.s32.totalorder %s121_s18, %s121_s18 }
  0xb5   :  { %p2325_p13 = scmp.ne.s32.totalorder %s121_s18, %s2324_s6  ;;  %p2330_p1 = scmp.lt.s32.totalorder %s2324_s6, %s2324_s6 }
  0xb7   :  { %p2331_p2 = por %p2330_p1, %p2329_p0 }
  0xb9   :  { %p2332_p3 = pnand %p2331_p2, %p2325_p13 }
  0xbb   :  { %2335 = shalt.err (!%p2332_p3)
}
  0xbc   :  { %126 = dma.hbm_to_vmem [thread:$0]  %s2871_s8, 3072, %s121_s18, [#allocation15], %s2450_s22, %s2450_s22, %s2451_s16  }
  0xbd   :  { %s2336_s5 = scalar_lea.hbm %s2873_s10, 48 }
  0xbe   :  { %p2337_p4 = scmp.ne.s32.totalorder %s2873_s10, %s2336_s5  ;;  %p2340_p5 = scmp.lt.u32.totalorder %s2336_s5, %s2873_s10 }
  0xc0   :  { %p2342_p6 = pnand %p2340_p5, %p2337_p4 }
  0xc2   :  { %2345 = shalt.err (!%p2342_p6)
}
  0xc3   :  { %s2346_s21 = scalar_lea.vmem %s146_s28, 48  ;;  %s2350_s4 = scalar_lea.vmem %s146_s28, 64 }
  0xc4   :  { %p2347_p7 = scmp.ne.s32.totalorder %s146_s28, %s2346_s21  ;;  %p2351_p8 = scmp.lt.s32.totalorder %s146_s28, %s146_s28 }
  0xc5   :  { %p2352_p9 = scmp.lt.s32.totalorder %s2350_s4, %s2346_s21 }
  0xc7   :  { %p2353_p10 = por %p2352_p9, %p2351_p8 }
  0xc9   :  { %p2354_p11 = pnand %p2353_p10, %p2347_p7 }
  0xcb   :  { %2357 = shalt.err (!%p2354_p11)
}
  0xcc   :  { %148 = dma.hbm_to_vmem [thread:$0]  %s2873_s10, 48, %s146_s28, [#allocation18]  }
  0xcd   :  { %s2458_s16 = smov [#allocation22]   ;;  %s2358_s11 = scalar_lea.hbm %s2875_s12, 48 }
  0xce   :  { %s167_s23 = sshll.u32 %s2458_s16, 4  ;;  %p2359_p12 = scmp.ne.s32.totalorder %s2875_s12, %s2358_s11  ;;  %s168_s23 = int_to_ptr.vmem [resolvable:$true] %s167_s23 }
  0xcf   :  { %p2362_p13 = scmp.lt.u32.totalorder %s2358_s11, %s2875_s12 }
  0xd1   :  { %p2364_p0 = pnand %p2362_p13, %p2359_p12 }
  0xd3   :  { %2367 = shalt.err (!%p2364_p0)
}
  0xd4   :  { %s2368_s2 = scalar_lea.vmem %s168_s23, 48  ;;  %s2372_s10 = scalar_lea.vmem %s168_s23, 64 }
  0xd5   :  { %p2369_p1 = scmp.ne.s32.totalorder %s168_s23, %s2368_s2  ;;  %p2373_p2 = scmp.lt.s32.totalorder %s168_s23, %s168_s23 }
  0xd6   :  { %p2374_p3 = scmp.lt.s32.totalorder %s2372_s10, %s2368_s2 }
  0xd8   :  { %p2375_p4 = por %p2374_p3, %p2373_p2 }
  0xda   :  { %p2376_p5 = pnand %p2375_p4, %p2369_p1 }
  0xdc   :  { %2379 = shalt.err (!%p2376_p5)
}
  0xdd   :  { %170 = dma.hbm_to_vmem [thread:$0]  %s2875_s12, 48, %s168_s23, [#allocation21]  }
  0xde   :  { %2424 = dma.done.wait [#allocation3], 64  }
  0xdf   :  { %2425 = vsyncadd [#allocation3], 4294967232 }
  0xe0   :  { %2426 = dma.done.wait [#allocation6], 576  }
  0xe1   :  { %2427 = vsyncadd [#allocation6], 4294966720 }
  0xe2   :  { %2428 = dma.done.wait [#allocation9], 1088  }
  0xe3   :  { %2429 = vsyncadd [#allocation9], 4294966208 }
  0xe4   :  { %2430 = dma.done.wait [#allocation12], 1040  }
  0xe5   :  { %2431 = vsyncadd [#allocation12], 4294966256 }
  0xe6   :  { %2432 = dma.done.wait [#allocation15], 3088  }
  0xe7   :  { %2433 = vsyncadd [#allocation15], 4294964208 }
  0xe8   :  { %2434 = dma.done.wait [#allocation18], 3120  }
  0xe9   :  { %2435 = vsyncadd [#allocation18], 4294964176 }
  0xea   :  { %2436 = dma.done.wait [#allocation21], 3120  }
  0xeb   :  { %2437 = vsyncadd [#allocation21], 4294964176  ;;  %v2459_v0 = vmov 0.0   ;;  %vm2460_vm0 = vmmov 0   ;;  %v1943_v1 = vld [vmem:[#allocation10] sm:$0xff]   ;;  %v1945_v3 = vld [vmem:[#allocation10 + $0x8] sm:$0xff]   ;;  %v482_v25 = vlaneseq }
  0xec   :  { %1803 = vmatprep.subr.bf16.mxu0 %v2459_v0  ;;  %1819 = vmatprep.mubr.msk.bf16.mxu0 %vm2460_vm0, %v2459_v0  ;;  %v1944_v2 = vld [vmem:[#allocation11] sm:$0xff]   ;;  %v1946_v4 = vld [vmem:[#allocation11 + $0x8] sm:$0xff]   ;;  %v1948_v5 = vld [vmem:[#allocation11 + $0x10] sm:$0xff]   ;;  %v2461_v23 = vmov 1966171168   ;;  %vm606_vm1 = vcmask 130112  }
  0xed   :  { %1804 = vmatpush3.bf16.msra.mxu0 %v1943_v1  ;;  %1823 = vmatprep.subr.bf16.mxu1 %v1944_v2  ;;  %v1947_v6 = vld [vmem:[#allocation10 + $0x10] sm:$0xff]   ;;  %v1950_v7 = vld [vmem:[#allocation11 + $0x18] sm:$0xff]   ;;  %v1952_v9 = vld [vmem:[#allocation11 + $0x20] sm:$0xff]   ;;  %v480_v24 = vunpack.c.l.s4 %v2461_v23  ;;  %v2751_v27 = vshrl.u32 %v482_v25, 7  ;;  %vm635_vm2 = vcmask 1041409   ;;  %vm637_vm3 = vcmask 1042434  }
  0xee   :  { %1805 = vmatprep.subr.bf16.mxu0 %v2459_v0  ;;  %1824 = vmatpush3.bf16.msra.mxu1 %v1944_v2  ;;  %v1949_v8 = vld [vmem:[#allocation10 + $0x18] sm:$0xff]   ;;  %v1951_v10 = vld [vmem:[#allocation10 + $0x20] sm:$0xff]   ;;  %v1953_v12 = vld [vmem:[#allocation10 + $0x28] sm:$0xff]   ;;  %vm639_vm4 = vcmask 1043459   ;;  %vm643_vm6 = vcmask 125952   ;;  %s2464_s12 = smov [#allocation24]  }
  0xef   :  { %1825 = vmatprep.subr.bf16.mxu1 %v1946_v4  ;;  %v2729_v11 = vld [vmem:[#allocation5] sm:$0xff]   ;;  %v1954_v13 = vld [vmem:[#allocation11 + $0x28] sm:$0xff]   ;;  %v1956_v14 = vld [vmem:[#allocation11 + $0x30] sm:$0xff]   ;;  %v481_v26 = vunpack.c.0.s8 %v480_v24  ;;  %v2755_v32 = vsub.s32 0, %v2751_v27  ;;  %s1639_s20 = sshll.u32 %s2464_s12, 4  ;;  %s2465_s6 = smov [#allocation23]   ;;  %s1640_s20 = int_to_ptr.vmem [resolvable:$true] %s1639_s20 }
  0xf0   :  { %1839 = vmatprep.mubr.bf16.mxu1 %v2729_v11  ;;  %v1955_v15 = vld [vmem:[#allocation10 + $0x30] sm:$0xff]   ;;  %v1958_v16 = vld [vmem:[#allocation11 + $0x38] sm:$0xff]   ;;  %v2734_v19 = vld [vmem:[#allocation5 + $0x8] sm:$0xff]   ;;  %s1629_s3 = sshll.u32 %s2465_s6, 4  ;;  %s2380_s26 = scalar_lea.vmem %s1640_s20, 64  ;;  %s1630_s3 = int_to_ptr.vmem [resolvable:$true] %s1629_s3 }
  0xf1   :  { %1806 = vmatpush3.bf16.msra.mxu0 %v1945_v3  ;;  %v1957_v17 = vld [vmem:[#allocation10 + $0x38] sm:$0xff]   ;;  %v211_v18 = vld [vmem:[#allocation2] sm:$0xf]  ;;  %v2737_v20 = vld [vmem:[#allocation5 + $0x10] sm:$0xff]   ;;  %v484_v28 = vsub.s32 %v481_v26, %v2751_v27  ;;  %p2381_p6 = scmp.ne.s32.totalorder %s1640_s20, %s2380_s26  ;;  %p2385_p7 = scmp.lt.s32.totalorder %s1640_s20, %s1640_s20 }
  0xf2   :  { %1807 = vmatprep.subr.bf16.mxu0 %v2459_v0  ;;  %1826 = vmatpush3.bf16.msra.mxu1 %v1946_v4  ;;  %v2739_v21 = vpack.c.bf16 %v211_v18, %v211_v18  ;;  %v2743_v22 = vld [vmem:[#allocation5 + $0x18] sm:$0xff]   ;;  %v1678_v43 = vld [vmem:[#allocation13] ss:$0 sm:$0xff]  ;;  %p2386_p8 = scmp.lt.s32.totalorder %s2380_s26, %s2380_s26 }
  0xf3   :  { %1827 = vmatprep.subr.bf16.mxu1 %v1948_v5 }
  0xf4   :  { %p2387_p9 = por %p2386_p8, %p2385_p7 }
  0xf5   :  { %1808 = vmatpush3.bf16.msra.mxu0 %v1947_v6  ;;  %v1679_v6 = vld [vmem:[#allocation14] ss:$0 sm:$0xff] }
  0xf6   :  { %1809 = vmatprep.subr.bf16.mxu0 %v2459_v0  ;;  %1828 = vmatpush3.bf16.msra.mxu1 %v1948_v5  ;;  %p2388_p10 = pnand %p2387_p9, %p2381_p6 }
  0xf7   :  { %1829 = vmatprep.subr.bf16.mxu1 %v1950_v7 }
  0xf9   :  { %1810 = vmatpush3.bf16.msra.mxu0 %v1949_v8 }
  0xfa   :  { %1811 = vmatprep.subr.bf16.mxu0 %v2459_v0  ;;  %1830 = vmatpush3.bf16.msra.mxu1 %v1950_v7 }
  0xfb   :  { %1831 = vmatprep.subr.bf16.mxu1 %v1952_v9 }
  0xfd   :  { %1812 = vmatpush3.bf16.msra.mxu0 %v1951_v10 }
  0xfe   :  { %1813 = vmatprep.subr.bf16.mxu0 %v2459_v0  ;;  %1832 = vmatpush3.bf16.msra.mxu1 %v1952_v9 }
  0xff   :  { %1833 = vmatprep.subr.bf16.mxu1 %v1954_v13 }
 0x101   :  { %1814 = vmatpush3.bf16.msra.mxu0 %v1953_v12 }
 0x102   :  { %1815 = vmatprep.subr.bf16.mxu0 %v2459_v0  ;;  %1834 = vmatpush3.bf16.msra.mxu1 %v1954_v13 }
 0x103   :  { %1835 = vmatprep.subr.bf16.mxu1 %v1956_v14 }
 0x105   :  { %1816 = vmatpush3.bf16.msra.mxu0 %v1955_v15 }
 0x106   :  { %1817 = vmatprep.subr.bf16.mxu0 %v2459_v0  ;;  %1836 = vmatpush3.bf16.msra.mxu1 %v1956_v14 }
 0x107   :  { %1837 = vmatprep.subr.bf16.mxu1 %v1958_v16 }
 0x109   :  { %1818 = vmatpush3.bf16.msra.mxu0 %v1957_v17 }
 0x10a   :  { %1838 = vmatpush3.bf16.msra.mxu1 %v1958_v16 }
 0x10b   :  { %1847 = vmatprep.subr.bf16.mxu1 %v2459_v0 }
 0x10c   :  { %1820 = vmatmul.mubr.bf16.vlgmr.msra.gmra.mrb[0].mxu0 %v2739_v21 }
 0x10d   :  { %1840 = vmatmul.mubr.bf16.vlgmr.msra.gmra.mrb[0].mxu1 %v2734_v19 }
 0x10e   :  { %1843 = vmatprep.mubr.bf16.mxu1 %v2737_v20 }
 0x115   :  { %1844 = vmatmul.mubr.bf16.gmra.mrb[4].mxu1 %v2743_v22 }
 0x116   :  { %1863 = vmatprep.mubr.msk.bf16.mxu1 %vm2460_vm0, %v2459_v0 }
 0x1df   :  { %v319_v29 = vpop.f32.mrb[0].mxu0 }
 0x1e0   :  { %v485_v30 = vrot.slane %v319_v29, %v484_v28  ;;  %v1821_v31 = vpop.f32.mrb[1].mxu0  ;;  %v1841_v34 = vpop.f32.mrb[0].mxu1 }
 0x1e1   :  { %v322_v33 = vpop.f32.mrb[2].mxu0  ;;  %v447_v38 = vpop.f32.mrb[1].mxu1  ;;  %v596_v31 = vand.u32 127, %v482_v25 }
 0x1e2   :  { %v486_v35 = vcombine.high %v485_v30, %v485_v30  ;;  %v493_v36 = vrot.slane %v485_v30, %v484_v28  ;;  %v1822_v37 = vpop.f32.mrb[3].mxu0  ;;  %v1842_v39 = vpop.f32.mrb[2].mxu1 }
 0x1e3   :  { %v450_v42 = vpop.f32.mrb[3].mxu1 }
 0x1e4   :  { %v500_v40 = vrot.slane %v486_v35, %v484_v28  ;;  %v506_v41 = vrot.slane %v493_v36, %v2755_v32  ;;  %v501_v44 = vcombine.high %v493_v36, %v493_v36 }
 0x1e6   :  { %v510_v45 = vrot.slane %v500_v40, %v2755_v32  ;;  %v523_v46 = vadd.f32 %v506_v41, %v447_v38  ;;  %v524_v47 = vadd.f32 %v506_v41, %v450_v42  ;;  %v502_v48 = vcombine.high %v500_v40, %v500_v40 }
 0x1e7   :  { %v514_v55 = vrot.slane %v501_v44, %v2755_v32 }
 0x1e8   :  { %v525_v49 = vadd.f32 %v1841_v34, %v510_v45  ;;  %v538_v50 = vadd.f32 %v1678_v43, %v523_v46  ;;  %v526_v51 = vadd.f32 %v1842_v39, %v510_v45  ;;  %v539_v52 = vadd.f32 %v1678_v43, %v524_v47  ;;  %v1845_v53 = vpop.f32.mrb[4].mxu1 }
 0x1e9   :  { %v518_v54 = vrot.slane %v502_v48, %v2755_v32  ;;  %v463_v58 = vpop.f32.mrb[5].mxu1  ;;  %v601_v34 = vadd.s32 4294967288, %v596_v31  ;;  %v599_v39 = vsub.s32 %v596_v31, %v2751_v27  ;;  %v585_v48 = vld [vmem:[#allocation7] sm:$0xf]  ;;  %v1981_v31 = vld [vmem:[#allocation17 + $0x64] ss:$12 sps:$4 sm:$0xff]  }
 0x1ea   :  { %v540_v56 = vadd.f32 %v1678_v43, %v525_v49  ;;  %2063 = vtanh.f32 %v538_v50  ;;  %v541_v57 = vadd.f32 %v1678_v43, %v526_v51  ;;  %v527_v60 = vadd.f32 %v514_v55, %v463_v58  ;;  %v1846_v61 = vpop.f32.mrb[6].mxu1 }
 0x1eb   :  { %2065 = vtanh.f32 %v539_v52  ;;  %v529_v59 = vadd.f32 %v1845_v53, %v518_v54  ;;  %v530_v62 = vadd.f32 %v1846_v61, %v518_v54  ;;  %v466_v63 = vpop.f32.mrb[7].mxu1  ;;  %v604_v37 = vsub.s32 %v601_v34, %v2751_v27  ;;  %v1982_v34 = vld [vmem:[#allocation17 + $0x68] ss:$12 sps:$4 sm:$0xff]  }
 0x1ec   :  { %2067 = vtanh.f32 %v540_v56  ;;  %v542_v1 = vadd.f32 %v1678_v43, %v527_v60  ;;  %v528_v2 = vadd.f32 %v514_v55, %v466_v63  ;;  %vm586_vm5 = vcmp.ne.s32.totalorder %v585_v48, 0 }
 0x1ed   :  { %2069 = vtanh.f32 %v541_v57  ;;  %v544_v4 = vadd.f32 %v1678_v43, %v529_v59  ;;  %v545_v5 = vadd.f32 %v1678_v43, %v530_v62  ;;  %v656_v48 = vunpack.c.h.bf16 %v2729_v11 }
 0x1ee   :  { %v543_v3 = vadd.f32 %v1678_v43, %v528_v2  ;;  %2071 = vtanh.f32 %v542_v1 }
 0x1f0   :  { %2073 = vtanh.f32 %v543_v3  ;;  %v1965_v3 = vld [vmem:[#allocation17 + $0x4] ss:$12 sps:$4 sm:$0xff]  }
 0x1f1   :  { %2075 = vtanh.f32 %v544_v4  ;;  %v1963_v4 = vld [vmem:[#allocation17] ss:$12 sps:$4 sm:$0xff]   ;;  %954 = vmatprep.subr.bf16.mxu0 %v1965_v3 }
 0x1f2   :  { %2077 = vtanh.f32 %v545_v5  ;;  %v1966_v5 = vld [vmem:[#allocation17 + $0x8] ss:$12 sps:$4 sm:$0xff]   ;;  %955 = vmatpush1.bf16.msra.mxu0 %v1963_v4 }
 0x1f3   :  { %1848 = vmatpush3.bf16.msra.mxu1 %v1966_v5 }
 0x1f4   :  { %v2064_v7 = vpop.eup %2063  ;;  %1849 = vmatprep.subr.bf16.mxu1 %v2459_v0 }
 0x1f5   :  { %v2066_v8 = vpop.eup %2065  ;;  %v561_v9 = vmul.f32 %v2064_v7, %v1679_v6 }
 0x1f6   :  { %v2068_v10 = vpop.eup %2067  ;;  %v562_v14 = vmul.f32 %v2066_v8, %v1679_v6  ;;  %v1969_v8 = vld [vmem:[#allocation17 + $0x1c] ss:$12 sps:$4 sm:$0xff]  }
 0x1f7   :  { %569 = vadd.xlane.f32.xlu0 %v561_v9  ;;  %v563_v12 = vmul.f32 %v2068_v10, %v1679_v6  ;;  %v2070_v13 = vpop.eup %2069  ;;  %v2774_v10 = vsub.s32 1, %v2751_v27  ;;  %956 = vmatprep.subr.bf16.mxu0 %v1969_v8  ;;  %v661_v8 = vunpack.c.l.bf16 %v2743_v22 }
 0x1f8   :  { %v2072_v15 = vpop.eup %2071  ;;  %v564_v16 = vmul.f32 %v2070_v13, %v1679_v6  ;;  %v1967_v13 = vld [vmem:[#allocation17 + $0x18] ss:$12 sps:$4 sm:$0xff]  }
 0x1f9   :  { %573 = vadd.xlane.f32.xlu1 %v563_v12  ;;  %v565_v18 = vmul.f32 %v2072_v15, %v1679_v6  ;;  %v2777_v12 = vsub.s32 2, %v2751_v27  ;;  %957 = vmatpush1.bf16.msra.mxu0 %v1967_v13  ;;  %v1973_v15 = vld [vmem:[#allocation17 + $0x34] ss:$12 sps:$4 sm:$0xff]  }
 0x1fa   :  { %v2074_v17 = vpop.eup %2073  ;;  %958 = vmatprep.subr.bf16.mxu0 %v1973_v15 }
 0x1fb   :  { %571 = vadd.xlane.f32.xlu0 %v562_v14  ;;  %v2076_v23 = vpop.eup %2075  ;;  %v566_v24 = vmul.f32 %v2074_v17, %v1679_v6  ;;  %v1970_v14 = vld [vmem:[#allocation17 + $0x20] ss:$12 sps:$4 sm:$0xff]  }
 0x1fc   :  { %v2078_v26 = vpop.eup %2077  ;;  %v567_v28 = vmul.f32 %v2076_v23, %v1679_v6  ;;  %1850 = vmatpush3.bf16.msra.mxu1 %v1970_v14  ;;  %v1971_v23 = vld [vmem:[#allocation17 + $0x30] ss:$12 sps:$4 sm:$0xff]  }
 0x1fd   :  { %575 = vadd.xlane.f32.xlu1 %v564_v16  ;;  %v568_v29 = vmul.f32 %v2078_v26, %v1679_v6  ;;  %1851 = vmatprep.subr.bf16.mxu1 %v2459_v0  ;;  %v1977_v26 = vld [vmem:[#allocation17 + $0x4c] ss:$12 sps:$4 sm:$0xff]  }
 0x1fe   :  { %959 = vmatpush1.bf16.msra.mxu0 %v1971_v23 }
 0x1ff   :  { %577 = vadd.xlane.f32.xlu0 %v565_v18  ;;  %v698_v18 = vsub.s32 3, %v2751_v27  ;;  %960 = vmatprep.subr.bf16.mxu0 %v1977_v26 }
 0x201   :  { %579 = vadd.xlane.f32.xlu1 %v566_v24  ;;  %v1974_v24 = vld [vmem:[#allocation17 + $0x38] ss:$12 sps:$4 sm:$0xff]  }
 0x202   :  { %1852 = vmatpush3.bf16.msra.mxu1 %v1974_v24 }
 0x203   :  { %581 = vadd.xlane.f32.xlu0 %v567_v28  ;;  %1853 = vmatprep.subr.bf16.mxu1 %v2459_v0 }
 0x205   :  { %583 = vadd.xlane.f32.xlu1 %v568_v29  ;;  %v1975_v29 = vld [vmem:[#allocation17 + $0x48] ss:$12 sps:$4 sm:$0xff]  }
 0x206   :  { %961 = vmatpush1.bf16.msra.mxu0 %v1975_v29 }
 0x207   :  { %962 = vmatprep.subr.bf16.mxu0 %v1981_v31 }
 0x284   :  { %v570_v30 = vpop.xlane.xlu0 %569 }
 0x285   :  { %v600_v47 = vrot.slane %v570_v30, %v599_v39  ;;  %v1978_v30 = vld [vmem:[#allocation17 + $0x50] ss:$12 sps:$4 sm:$0xff]  }
 0x286   :  { %v574_v33 = vpop.xlane.xlu1 %573  ;;  %1854 = vmatpush3.bf16.msra.mxu1 %v1978_v30 }
 0x287   :  { %v611_v42 = vrot.slane %v574_v33, %v599_v39  ;;  %v1979_v33 = vld [vmem:[#allocation17 + $0x60] ss:$12 sps:$4 sm:$0xff]   ;;  %1855 = vmatprep.subr.bf16.mxu1 %v2459_v0 }
 0x288   :  { %v572_v35 = vpop.xlane.xlu0 %571  ;;  %963 = vmatpush1.bf16.msra.mxu0 %v1979_v33 }
 0x289   :  { %v605_v43 = vrot.slane %v572_v35, %v604_v37  ;;  %v1985_v35 = vld [vmem:[#allocation17 + $0x7c] ss:$12 sps:$4 sm:$0xff]  }
 0x28a   :  { %v576_v36 = vpop.xlane.xlu1 %575  ;;  %1856 = vmatpush3.bf16.msra.mxu1 %v1982_v34  ;;  %964 = vmatprep.subr.bf16.mxu0 %v1985_v35 }
 0x28b   :  { %v615_v40 = vrot.slane %v576_v36, %v604_v37  ;;  %v607_v51 = vsel %vm606_vm1, %v605_v43, %v600_v47  ;;  %v1983_v36 = vld [vmem:[#allocation17 + $0x78] ss:$12 sps:$4 sm:$0xff]   ;;  %1857 = vmatprep.subr.bf16.mxu1 %v2459_v0  ;;  %v1994_v43 = vld [vmem:[#allocation17 + $0xb0] ss:$12 sps:$4 sm:$0xff]  }
 0x28c   :  { %v578_v38 = vpop.xlane.xlu0 %577  ;;  %965 = vmatpush1.bf16.msra.mxu0 %v1983_v36 }
 0x28d   :  { %v620_v45 = vrot.slane %v578_v38, %v599_v39  ;;  %v616_v25 = vsel %vm606_vm1, %v615_v40, %v611_v42  ;;  %v1989_v38 = vld [vmem:[#allocation17 + $0x94] ss:$12 sps:$4 sm:$0xff]   ;;  %v1990_v40 = vld [vmem:[#allocation17 + $0x98] ss:$12 sps:$4 sm:$0xff]  }
 0x28e   :  { %v580_v41 = vpop.xlane.xlu1 %579  ;;  %v636_v54 = vsel %vm635_vm2, %v616_v25, %v607_v51  ;;  %966 = vmatprep.subr.bf16.mxu0 %v1989_v38  ;;  %v1991_v42 = vld [vmem:[#allocation17 + $0xa8] ss:$12 sps:$4 sm:$0xff]   ;;  %v655_v25 = vunpack.c.l.bf16 %v2729_v11  ;;  %v660_v11 = vunpack.c.h.bf16 %v2737_v20 }
 0x28f   :  { %v624_v44 = vrot.slane %v580_v41, %v604_v37  ;;  %v1993_v41 = vld [vmem:[#allocation17 + $0xac] ss:$12 sps:$4 sm:$0xff]  }
 0x290   :  { %v582_v46 = vpop.xlane.xlu0 %581 }
 0x291   :  { %v625_v49 = vsel %vm606_vm1, %v624_v44, %v620_v45  ;;  %v629_v52 = vrot.slane %v582_v46, %v599_v39  ;;  %v1987_v39 = vld [vmem:[#allocation17 + $0x90] ss:$12 sps:$4 sm:$0xff]   ;;  %v2462_v45 = vmov 0   ;;  %v743_v46 = vld [vmem:[#allocation8] sm:$0xf] }
 0x292   :  { %v584_v50 = vpop.xlane.xlu1 %583  ;;  %v638_v56 = vsel %vm637_vm3, %v625_v49, %v636_v54  ;;  %967 = vmatpush1.bf16.msra.mxu0 %v1987_v39  ;;  %v1997_v44 = vld [vmem:[#allocation16 + $0x4] ss:$12 sps:$4 sm:$0xff]   ;;  %986 = vmatprep.mubr.bf16.mxu0 %v2462_v45  ;;  %v2790_v47 = vpack.c.bf16 %v743_v46, %v743_v46 }
 0x293   :  { %v633_v53 = vrot.slane %v584_v50, %v604_v37  ;;  %v1986_v37 = vld [vmem:[#allocation17 + $0x80] ss:$12 sps:$4 sm:$0xff]   ;;  %968 = vmatprep.subr.bf16.mxu0 %v1993_v41 }
 0x294   :  { %1858 = vmatpush3.bf16.msra.mxu1 %v1986_v37  ;;  %1544 = vst [vmem:[#allocation23] sm:$0x3] %v2790_v47 }
 0x295   :  { %v634_v55 = vsel %vm606_vm1, %v633_v53, %v629_v52  ;;  %1859 = vmatprep.subr.bf16.mxu1 %v2459_v0 }
 0x296   :  { %v640_v57 = vsel %vm639_vm4, %v634_v55, %v638_v56  ;;  %969 = vmatpush1.bf16.msra.mxu0 %v1991_v42  ;;  %v657_v56 = vunpack.c.l.bf16 %v2734_v19 }
 0x297   :  { %v642_v58 = vsel %vm586_vm5, %v640_v57, -1e+10  ;;  %1163 = vmatprep.subr.bf16.mxu0 %v1997_v44  ;;  %v658_v57 = vunpack.c.h.bf16 %v2734_v19 }
 0x298   :  { %v644_v59 = vsel %vm643_vm6, %v642_v58, -inf  ;;  %1860 = vmatpush3.bf16.msra.mxu1 %v1990_v40 }
 0x299   :  { %645 = vmax.xlane.f32.xlu0 %v644_v59  ;;  %1861 = vmatprep.subr.bf16.mxu1 %v2459_v0 }
 0x29c   :  { %1862 = vmatpush3.bf16.msra.mxu1 %v1994_v43 }
 0x29d   :  { %1867 = vmatprep.subr.bf16.mxu1 %v2459_v0 }
 0x326   :  { %v646_v60 = vpop.xlane.xlu0 %645 }
 0x327   :  { %v647_v61 = vsub.f32 %v642_v58, %v646_v60 }
 0x329   :  { %v648_v62 = vmul.f32 1.442695, %v647_v61  ;;  %v659_v61 = vunpack.c.l.bf16 %v2737_v20 }
 0x32b   :  { %2079 = vpow2.f32 %v648_v62 }
 0x335   :  { %v2080_v63 = vpop.eup %2079 }
 0x336   :  { %v650_v1 = vsel %vm643_vm6, %v2080_v63, 0.0 }
 0x337   :  { %651 = vadd.xlane.f32.xlu1 %v650_v1 }
 0x3c4   :  { %v652_v2 = vpop.xlane.xlu1 %651 }
 0x3c5   :  { %2081 = vrcp.f32 %v652_v2 }
 0x3cf   :  { %v2082_v6 = vpop.eup %2081 }
 0x3d0   :  { %v654_v7 = vmul.f32 %v2082_v6, %v2080_v63 }
 0x3d2   :  { %v666_v9 = vrot.slane %v654_v7, %v2755_v32  ;;  %v677_v16 = vrot.slane %v654_v7, %v2774_v10  ;;  %v688_v17 = vrot.slane %v654_v7, %v2777_v12  ;;  %v699_v28 = vrot.slane %v654_v7, %v698_v18 }
 0x3d3   :  { %v662_v7 = vunpack.c.h.bf16 %v2743_v22 }
 0x3d4   :  { %672 = vbcast.lane.b32.xlu1 %v666_v9, 264  ;;  %668 = vbcast.lane.b32.xlu0 %v666_v9, 256 }
 0x3d8   :  { %679 = vbcast.lane.b32.xlu1 %v677_v16, 256  ;;  %690 = vbcast.lane.b32.xlu0 %v688_v17, 256 }
 0x3dc   :  { %683 = vbcast.lane.b32.xlu1 %v677_v16, 264  ;;  %701 = vbcast.lane.b32.xlu0 %v699_v28, 256  ;;  %v2463_v16 = vmov 1983009808  }
 0x3e0   :  { %694 = vbcast.lane.b32.xlu1 %v688_v17, 264  ;;  %v1548_v17 = vunpack.c.l.s4 %v2463_v16 }
 0x3e2   :  { %v1549_v31 = vunpack.c.0.s8 %v1548_v17  ;;  %v2005_v17 = vld [vmem:[#allocation16 + $0x34] ss:$12 sps:$4 sm:$0xff]  }
 0x3e4   :  { %705 = vbcast.lane.b32.xlu1 %v699_v28, 264  ;;  %v1552_v39 = vsub.s32 %v1549_v31, %v2751_v27  ;;  %v2013_v31 = vld [vmem:[#allocation16 + $0x64] ss:$12 sps:$4 sm:$0xff]  }
 0x446   :  { %v673_v49 = vpop.permute.xlu1 %672  ;;  %v669_v50 = vpop.permute.xlu0 %668 }
 0x447   :  { %v708_v51 = vmul.f32 %v673_v49, %v656_v48  ;;  %v707_v52 = vmul.f32 %v669_v50, %v655_v25 }
 0x449   :  { %v715_v53 = vadd.f32 %v708_v51, %v707_v52 }
 0x44a   :  { %v680_v54 = vpop.permute.xlu1 %679  ;;  %v691_v62 = vpop.permute.xlu0 %690 }
 0x44b   :  { %v716_v55 = vrot.slane %v715_v53, 4  ;;  %v709_v60 = vmul.f32 %v680_v54, %v657_v56  ;;  %v711_v4 = vmul.f32 %v691_v62, %v659_v61 }
 0x44d   :  { %v717_v58 = vadd.f32 %v716_v55, %v715_v53 }
 0x44e   :  { %v684_v59 = vpop.permute.xlu1 %683  ;;  %v702_v9 = vpop.permute.xlu0 %701 }
 0x44f   :  { %v710_v63 = vmul.f32 %v684_v59, %v658_v57  ;;  %v718_v2 = vrot.slane %v717_v58, 2  ;;  %v713_v24 = vmul.f32 %v702_v9, %v661_v8  ;;  %v2001_v8 = vld [vmem:[#allocation16 + $0x1c] ss:$12 sps:$4 sm:$0xff]  }
 0x451   :  { %v722_v1 = vadd.f32 %v710_v63, %v709_v60  ;;  %v719_v14 = vadd.f32 %v718_v2, %v717_v58 }
 0x452   :  { %v695_v3 = vpop.permute.xlu1 %694 }
 0x453   :  { %v723_v5 = vrot.slane %v722_v1, 4  ;;  %v712_v6 = vmul.f32 %v695_v3, %v660_v11  ;;  %v720_v29 = vrot.slane %v719_v14, 1  ;;  %v1995_v3 = vld [vmem:[#allocation16] ss:$12 sps:$4 sm:$0xff]  }
 0x455   :  { %v724_v19 = vadd.f32 %v723_v5, %v722_v1  ;;  %v729_v13 = vadd.f32 %v712_v6, %v711_v4  ;;  %v721_v37 = vadd.f32 %v720_v29, %v719_v14  ;;  %v1998_v5 = vld [vmem:[#allocation16 + $0x8] ss:$12 sps:$4 sm:$0xff]   ;;  %v2002_v14 = vld [vmem:[#allocation16 + $0x20] ss:$12 sps:$4 sm:$0xff]  }
 0x456   :  { %v706_v15 = vpop.permute.xlu1 %705  ;;  %v2007_v29 = vld [vmem:[#allocation16 + $0x48] ss:$12 sps:$4 sm:$0xff]  }
 0x457   :  { %v725_v18 = vrot.slane %v724_v19, 2  ;;  %v730_v23 = vrot.slane %v729_v13, 4  ;;  %v714_v20 = vmul.f32 %v706_v15, %v662_v7  ;;  %v777_v46 = vpack.c.bf16 %v721_v37, %v721_v37  ;;  %v2021_v37 = vld [vmem:[#allocation16 + $0x94] ss:$12 sps:$4 sm:$0xff]  }
 0x459   :  { %v726_v26 = vadd.f32 %v725_v18, %v724_v19  ;;  %v731_v28 = vadd.f32 %v730_v23, %v729_v13  ;;  %v736_v30 = vadd.f32 %v714_v20, %v713_v24  ;;  %v1553_v52 = vrot.slane %v777_v46, %v1552_v39  ;;  %v1999_v13 = vld [vmem:[#allocation16 + $0x18] ss:$12 sps:$4 sm:$0xff]   ;;  %v2003_v24 = vld [vmem:[#allocation16 + $0x30] ss:$12 sps:$4 sm:$0xff]  }
 0x45a   :  { %v817_v57 = vunpack.c.l.b16 %v777_v46  ;;  %v2048_v46 = vld [vmem:[#allocation20 + $0x8] ss:$12 sps:$4 sm:$0xff]  }
 0x45b   :  { %v727_v33 = vrot.slane %v726_v26, 1  ;;  %v732_v34 = vrot.slane %v731_v28, 2  ;;  %v737_v35 = vrot.slane %v736_v30, 4  ;;  %v1581_v60 = vrot.slane %v1553_v52, %v1552_v39  ;;  %v2053_v52 = vld [vmem:[#allocation20 + $0x38] ss:$12 sps:$4 sm:$0xff]  }
 0x45d   :  { %v728_v22 = vadd.f32 %v727_v33, %v726_v26  ;;  %v733_v36 = vadd.f32 %v732_v34, %v731_v28  ;;  %v738_v38 = vadd.f32 %v737_v35, %v736_v30  ;;  %v1603_v19 = vunpack.c.l.b16 %v1581_v60  ;;  %v2006_v26 = vld [vmem:[#allocation16 + $0x38] ss:$12 sps:$4 sm:$0xff]   ;;  %v2010_v30 = vld [vmem:[#allocation16 + $0x50] ss:$12 sps:$4 sm:$0xff]   ;;  %v2011_v33 = vld [vmem:[#allocation16 + $0x60] ss:$12 sps:$4 sm:$0xff]  }
 0x45e   :  { %v2009_v28 = vld [vmem:[#allocation16 + $0x4c] ss:$12 sps:$4 sm:$0xff]   ;;  %v2014_v34 = vld [vmem:[#allocation16 + $0x68] ss:$12 sps:$4 sm:$0xff]  }
 0x45f   :  { %v778_v40 = vpack.c.bf16 %v728_v22, %v728_v22  ;;  %v734_v41 = vrot.slane %v733_v36, 1  ;;  %v739_v42 = vrot.slane %v738_v38, 2  ;;  %v2017_v35 = vld [vmem:[#allocation16 + $0x7c] ss:$12 sps:$4 sm:$0xff]   ;;  %v2015_v22 = vld [vmem:[#allocation16 + $0x78] ss:$12 sps:$4 sm:$0xff]  }
 0x460   :  { %v2045_v60 = vld [vmem:[#allocation20 + $0x90] ss:$12 sps:$4 sm:$0xff]  }
 0x461   :  { %v1560_v43 = vrot.slane %v778_v40, %v1552_v39  ;;  %v735_v44 = vadd.f32 %v734_v41, %v733_v36  ;;  %v740_v25 = vadd.f32 %v739_v42, %v738_v38  ;;  %v818_v53 = vunpack.c.l.b16 %v778_v40  ;;  %v2018_v36 = vld [vmem:[#allocation16 + $0x80] ss:$12 sps:$4 sm:$0xff]   ;;  %v2019_v38 = vld [vmem:[#allocation16 + $0x90] ss:$12 sps:$4 sm:$0xff]   ;;  %v2023_v41 = vld [vmem:[#allocation16 + $0xa8] ss:$12 sps:$4 sm:$0xff]  }
 0x462   :  { %v2025_v40 = vld [vmem:[#allocation16 + $0xac] ss:$12 sps:$4 sm:$0xff]   ;;  %v2026_v42 = vld [vmem:[#allocation16 + $0xb0] ss:$12 sps:$4 sm:$0xff]  }
 0x463   :  { %v779_v48 = vpack.c.bf16 %v735_v44, %v735_v44  ;;  %v1588_v49 = vrot.slane %v1560_v43, %v1552_v39  ;;  %v741_v50 = vrot.slane %v740_v25, 1  ;;  %v821_v63 = vsel %vm635_vm2, %v818_v53, %v817_v57  ;;  %v2029_v43 = vld [vmem:[#allocation20 + $0x4] ss:$12 sps:$4 sm:$0xff]   ;;  %v2027_v44 = vld [vmem:[#allocation20] ss:$12 sps:$4 sm:$0xff]  }
 0x464   :  { %v2038_v53 = vld [vmem:[#allocation20 + $0x4c] ss:$12 sps:$4 sm:$0xff]   ;;  %v2044_v57 = vld [vmem:[#allocation20 + $0x7c] ss:$12 sps:$4 sm:$0xff]  }
 0x465   :  { %v1567_v51 = vrot.slane %v779_v48, %v1552_v39  ;;  %v742_v54 = vadd.f32 %v741_v50, %v740_v25  ;;  %v819_v55 = vunpack.c.l.b16 %v779_v48  ;;  %v1604_v58 = vunpack.c.l.b16 %v1588_v49  ;;  %v2032_v25 = vld [vmem:[#allocation20 + $0x1c] ss:$12 sps:$4 sm:$0xff]   ;;  %v2030_v48 = vld [vmem:[#allocation20 + $0x18] ss:$12 sps:$4 sm:$0xff]   ;;  %v2052_v49 = vld [vmem:[#allocation20 + $0x20] ss:$12 sps:$4 sm:$0xff]  }
 0x466   :  { %v2035_v50 = vld [vmem:[#allocation20 + $0x34] ss:$12 sps:$4 sm:$0xff]  }
 0x467   :  { %v1595_v56 = vrot.slane %v1567_v51, %v1552_v39  ;;  %v780_v59 = vpack.c.bf16 %v742_v54, %v742_v54  ;;  %v822_v11 = vsel %vm637_vm3, %v819_v55, %v821_v63  ;;  %v1607_v1 = vrot.slane %v1604_v58, 7  ;;  %v2033_v51 = vld [vmem:[#allocation20 + $0x30] ss:$12 sps:$4 sm:$0xff]   ;;  %v2042_v58 = vld [vmem:[#allocation20 + $0x78] ss:$12 sps:$4 sm:$0xff]  }
 0x468   :  { %v2054_v54 = vld [vmem:[#allocation20 + $0x50] ss:$12 sps:$4 sm:$0xff]   ;;  %v2049_v63 = vld [vmem:[#allocation20 + $0xa8] ss:$12 sps:$4 sm:$0xff]  }
 0x469   :  { %v1605_v27 = vunpack.c.l.b16 %v1595_v56  ;;  %v820_v61 = vunpack.c.l.b16 %v780_v59  ;;  %v1574_v62 = vrot.slane %v780_v59, %v1552_v39  ;;  %v1608_v15 = vsel %vm635_vm2, %v1607_v1, %v1603_v19  ;;  %v2041_v55 = vld [vmem:[#allocation20 + $0x64] ss:$12 sps:$4 sm:$0xff]   ;;  %v2055_v56 = vld [vmem:[#allocation20 + $0x68] ss:$12 sps:$4 sm:$0xff]   ;;  %v2056_v59 = vld [vmem:[#allocation20 + $0x80] ss:$12 sps:$4 sm:$0xff]  }
 0x46b   :  { %v1602_v2 = vrot.slane %v1574_v62, %v1552_v39  ;;  %v823_v4 = vsel %vm639_vm4, %v820_v61, %v822_v11  ;;  %v1609_v6 = vrot.slane %v1605_v27, 6  ;;  %v2022_v39 = vld [vmem:[#allocation16 + $0x98] ss:$12 sps:$4 sm:$0xff]   ;;  %v2057_v61 = vld [vmem:[#allocation20 + $0x98] ss:$12 sps:$4 sm:$0xff]  }
 0x46c   :  { %v824_v7 = vpack.c.b16 %v823_v4, %v823_v4  ;;  %v2047_v27 = vld [vmem:[#allocation20 + $0x94] ss:$12 sps:$4 sm:$0xff]   ;;  %v2051_v62 = vld [vmem:[#allocation20 + $0xac] ss:$12 sps:$4 sm:$0xff]   ;;  %v2058_v11 = vld [vmem:[#allocation20 + $0xb0] ss:$12 sps:$4 sm:$0xff]  }
 0x46d   :  { %v1606_v9 = vunpack.c.l.b16 %v1602_v2  ;;  %v1610_v18 = vsel %vm637_vm3, %v1609_v6, %v1608_v15 }
 0x46e   :  { %987 = vmatmul.mubr.bf16.vlgmr.msra.gmra.mrb[4].mxu0 %v824_v7  ;;  %1864 = vmatmul.mubr.bf16.vlgmr.msra.gmra.mrb[8].mxu1 %v824_v7 }
 0x46f   :  { %1164 = vmatpush1.bf16.msra.mxu0 %v1995_v3  ;;  %1868 = vmatpush3.bf16.msra.mxu1 %v1998_v5  ;;  %v1611_v16 = vrot.slane %v1606_v9, 5  ;;  %v1296_v9 = vld [vmem:[#allocation22] sm:$0x7] }
 0x470   :  { %1165 = vmatprep.subr.bf16.mxu0 %v2001_v8  ;;  %1869 = vmatprep.subr.bf16.mxu1 %v2459_v0 }
 0x471   :  { %1883 = vmatprep.mubr.msk.bf16.mxu1 %vm2460_vm0, %v2459_v0  ;;  %1195 = vmatprep.mubr.bf16.mxu0 %v2462_v45  ;;  %v1612_v23 = vsel %vm639_vm4, %v1611_v16, %v1610_v18  ;;  %v1305_v16 = vrot.slane %v1296_v9, %v2774_v10 }
 0x472   :  { %v1613_v20 = vpack.c.b16 %v1612_v23, %v1612_v23 }
 0x473   :  { %1166 = vmatpush1.bf16.msra.mxu0 %v1999_v13  ;;  %1870 = vmatpush3.bf16.msra.mxu1 %v2002_v14  ;;  %v1244_v13 = vld [vmem:[#allocation19] sm:$0x7] }
 0x474   :  { %1167 = vmatprep.subr.bf16.mxu0 %v2005_v17  ;;  %1871 = vmatprep.subr.bf16.mxu1 %v2459_v0  ;;  %1754 = vst.sshfl [vmem:[#allocation23 + $0x4] sm:$0x3 pattern:$0x76325410] %v1613_v20  ;;  %v1249_v14 = vrot.slane %v1244_v13, %v2755_v32  ;;  %v1253_v15 = vrot.slane %v1244_v13, %v2774_v10 }
 0x475   :  { %v1309_v10 = vrot.slane %v1296_v9, %v2777_v12 }
 0x476   :  { %v1909_v18 = vadd.f32 %v1305_v16, %v1253_v15 }
 0x477   :  { %1168 = vmatpush1.bf16.msra.mxu0 %v2003_v24  ;;  %1872 = vmatpush3.bf16.msra.mxu1 %v2006_v26 }
 0x478   :  { %1169 = vmatprep.subr.bf16.mxu0 %v2009_v28  ;;  %1873 = vmatprep.subr.bf16.mxu1 %v2459_v0 }
 0x47b   :  { %1170 = vmatpush1.bf16.msra.mxu0 %v2007_v29  ;;  %1874 = vmatpush3.bf16.msra.mxu1 %v2010_v30 }
 0x47c   :  { %1171 = vmatprep.subr.bf16.mxu0 %v2013_v31  ;;  %1875 = vmatprep.subr.bf16.mxu1 %v2459_v0 }
 0x47f   :  { %1172 = vmatpush1.bf16.msra.mxu0 %v2011_v33  ;;  %1876 = vmatpush3.bf16.msra.mxu1 %v2014_v34 }
 0x480   :  { %1173 = vmatprep.subr.bf16.mxu0 %v2017_v35  ;;  %1877 = vmatprep.subr.bf16.mxu1 %v2459_v0 }
 0x483   :  { %1174 = vmatpush1.bf16.msra.mxu0 %v2015_v22  ;;  %1878 = vmatpush3.bf16.msra.mxu1 %v2018_v36 }
 0x484   :  { %1175 = vmatprep.subr.bf16.mxu0 %v2021_v37  ;;  %1879 = vmatprep.subr.bf16.mxu1 %v2459_v0  ;;  %v1257_v37 = vrot.slane %v1244_v13, %v2777_v12 }
 0x487   :  { %1176 = vmatpush1.bf16.msra.mxu0 %v2019_v38  ;;  %1880 = vmatpush3.bf16.msra.mxu1 %v2022_v39 }
 0x488   :  { %1177 = vmatprep.subr.bf16.mxu0 %v2025_v40  ;;  %1881 = vmatprep.subr.bf16.mxu1 %v2459_v0 }
 0x48b   :  { %1178 = vmatpush1.bf16.msra.mxu0 %v2023_v41  ;;  %1882 = vmatpush3.bf16.msra.mxu1 %v2026_v42 }
 0x48c   :  { %1441 = vmatprep.subr.bf16.mxu0 %v2029_v43  ;;  %1887 = vmatprep.subr.bf16.mxu1 %v2459_v0 }
 0x48e   :  { %1884 = vmatmul.mubr.bf16.vlgmr.msra.gmra.mrb[12].mxu1 %v2790_v47  ;;  %1196 = vmatmul.mubr.bf16.vlgmr.msra.gmra.mrb[4].mxu0 %v2790_v47  ;;  %v2036_v47 = vld [vmem:[#allocation20 + $0x48] ss:$12 sps:$4 sm:$0xff]  }
 0x48f   :  { %1442 = vmatpush1.bf16.msra.mxu0 %v2027_v44  ;;  %1888 = vmatpush3.bf16.msra.mxu1 %v2048_v46 }
 0x490   :  { %1443 = vmatprep.subr.bf16.mxu0 %v2032_v25  ;;  %1889 = vmatprep.subr.bf16.mxu1 %v2459_v0 }
 0x491   :  { %1473 = vmatprep.mubr.bf16.mxu0 %v2462_v45  ;;  %1903 = vmatprep.mubr.msk.bf16.mxu1 %vm2460_vm0, %v2459_v0  ;;  %v2039_v45 = vld [vmem:[#allocation20 + $0x60] ss:$12 sps:$4 sm:$0xff]  }
 0x493   :  { %1444 = vmatpush1.bf16.msra.mxu0 %v2030_v48  ;;  %1890 = vmatpush3.bf16.msra.mxu1 %v2052_v49  ;;  %v2093_v49 = vld [vmem:[#allocation2] sm:$0xf] }
 0x494   :  { %1445 = vmatprep.subr.bf16.mxu0 %v2035_v50  ;;  %1891 = vmatprep.subr.bf16.mxu1 %v2459_v0 }
 0x497   :  { %1446 = vmatpush1.bf16.msra.mxu0 %v2033_v51  ;;  %1892 = vmatpush3.bf16.msra.mxu1 %v2053_v52 }
 0x498   :  { %1447 = vmatprep.subr.bf16.mxu0 %v2038_v53  ;;  %1893 = vmatprep.subr.bf16.mxu1 %v2459_v0 }
 0x49b   :  { %1448 = vmatpush1.bf16.msra.mxu0 %v2036_v47  ;;  %1894 = vmatpush3.bf16.msra.mxu1 %v2054_v54 }
 0x49c   :  { %1449 = vmatprep.subr.bf16.mxu0 %v2041_v55  ;;  %1895 = vmatprep.subr.bf16.mxu1 %v2459_v0 }
 0x49f   :  { %1450 = vmatpush1.bf16.msra.mxu0 %v2039_v45  ;;  %1896 = vmatpush3.bf16.msra.mxu1 %v2055_v56 }
 0x4a0   :  { %1451 = vmatprep.subr.bf16.mxu0 %v2044_v57  ;;  %1897 = vmatprep.subr.bf16.mxu1 %v2459_v0 }
 0x4a3   :  { %1452 = vmatpush1.bf16.msra.mxu0 %v2042_v58  ;;  %1898 = vmatpush3.bf16.msra.mxu1 %v2056_v59 }
 0x4a4   :  { %1453 = vmatprep.subr.bf16.mxu0 %v2047_v27  ;;  %1899 = vmatprep.subr.bf16.mxu1 %v2459_v0 }
 0x4a7   :  { %1454 = vmatpush1.bf16.msra.mxu0 %v2045_v60  ;;  %1900 = vmatpush3.bf16.msra.mxu1 %v2057_v61 }
 0x4a8   :  { %1455 = vmatprep.subr.bf16.mxu0 %v2051_v62  ;;  %1901 = vmatprep.subr.bf16.mxu1 %v2459_v0  ;;  %v1301_v0 = vrot.slane %v1296_v9, %v2755_v32 }
 0x4ab   :  { %1456 = vmatpush1.bf16.msra.mxu0 %v2049_v63  ;;  %1902 = vmatpush3.bf16.msra.mxu1 %v2058_v11 }
 0x4ae   :  { %1474 = vmatmul.mubr.bf16.vlgmr.msra.gmra.mrb[4].mxu0 %v2739_v21  ;;  %1904 = vmatmul.mubr.bf16.vlgmr.msra.gmra.mrb[16].mxu1 %v2739_v21  ;;  %v1907_v21 = vadd.f32 %v1301_v0, %v1249_v14 }
 0x541   :  { %v1029_v1 = vpop.f32.mrb[8].mxu1 }
 0x542   :  { %v1865_v2 = vpop.f32.mrb[9].mxu1 }
 0x543   :  { %v1032_v3 = vpop.f32.mrb[10].mxu1 }
 0x544   :  { %v1866_v4 = vpop.f32.mrb[11].mxu1 }
 0x561   :  { %v1238_v5 = vpop.f32.mrb[12].mxu1 }
 0x562   :  { %v1239_v6 = vadd.f32 %v1238_v5, %v1029_v1  ;;  %v1885_v7 = vpop.f32.mrb[13].mxu1 }
 0x563   :  { %v1241_v8 = vpop.f32.mrb[14].mxu1 }
 0x564   :  { %v1886_v19 = vpop.f32.mrb[15].mxu1  ;;  %v1263_v41 = vadd.f32 %v1257_v37, %v1239_v6 }
 0x581   :  { %v1475_v17 = vpop.f32.mrb[4].mxu0  ;;  %v1516_v23 = vpop.f32.mrb[16].mxu1 }
 0x582   :  { %v1908_v20 = vadd.f32 %v1907_v21, %v1475_v17  ;;  %v1477_v24 = vpop.f32.mrb[5].mxu0  ;;  %v1905_v26 = vpop.f32.mrb[17].mxu1  ;;  %v1517_v39 = vadd.f32 %v1516_v23, %v1309_v10 }
 0x583   :  { %v1479_v28 = vpop.f32.mrb[6].mxu0  ;;  %v1519_v29 = vpop.f32.mrb[18].mxu1  ;;  %v1910_v34 = vadd.f32 %v1909_v18, %v1477_v24 }
 0x584   :  { %v1752_v30 = vmul.f32 -1.442695, %v1908_v20  ;;  %v1480_v31 = vpop.f32.mrb[7].mxu0  ;;  %v1906_v33 = vpop.f32.mrb[19].mxu1 }
 0x585   :  { %v1753_v35 = vmul.f32 -1.442695, %v1910_v34 }
 0x586   :  { %2083 = vpow2.f32 %v1752_v30 }
 0x587   :  { %2085 = vpow2.f32 %v1753_v35 }
 0x590   :  { %v2084_v32 = vpop.eup %2083 }
 0x591   :  { %v1526_v22 = vadd.f32 1.0, %v2084_v32  ;;  %v2086_v36 = vpop.eup %2085 }
 0x592   :  { %v1533_v38 = vadd.f32 1.0, %v2086_v36 }
 0x593   :  { %2087 = vrcp.f32 %v1526_v22 }
 0x594   :  { %2089 = vrcp.f32 %v1533_v38 }
 0x59d   :  { %v2088_v40 = vpop.eup %2087 }
 0x59e   :  { %v1536_v42 = vmul.f32 %v2088_v40, %v1517_v39  ;;  %v2090_v44 = vpop.eup %2089 }
 0x59f   :  { %v1539_v46 = vsub.f32 1.0, %v2090_v44  ;;  %v1541_v50 = vmul.f32 %v2093_v49, %v2090_v44 }
 0x5a0   :  { %v1537_v43 = vadd.f32 %v1536_v42, %v1263_v41 }
 0x5a2   :  { %2091 = vtanh.f32 %v1537_v43 }
 0x5ac   :  { %v2092_v25 = vpop.eup %2091 }
 0x5ad   :  { %v1540_v48 = vmul.f32 %v2092_v25, %v1539_v46 }
 0x5af   :  { %v1542_v51 = vadd.f32 %v1541_v50, %v1540_v48 }
 0x5b1   :  { %v1545_v12 = vpack.c.bf16 %v1542_v51, %v1542_v51  ;;  %1543 = vst [vmem:[#allocation24] sm:$0xf] %v1542_v51 }
 0x5b2   :  { %2391 = shalt.err (!%p2388_p10)
}
 0x5b3   :  { %s2392_s5 = scalar_lea.hbm %s2877_s14, 64 }
 0x5b4   :  { %p2393_p11 = scmp.ne.s32.totalorder %s2877_s14, %s2392_s5  ;;  %p2396_p12 = scmp.lt.u32.totalorder %s2392_s5, %s2877_s14 }
 0x5b6   :  { %p2398_p13 = pnand %p2396_p12, %p2393_p11 }
 0x5b8   :  { %2401 = shalt.err (!%p2398_p13)
}
 0x5b9   :  { %1642 = dma.vmem_to_hbm [thread:$0]  %s1640_s20, 64, %s2877_s14, [#allocation25]   ;;  %1546 = vst [vmem:[#allocation23 + $0x2] sm:$0x3] %v1545_v12 }
 0x5ba   :  { %s2402_s8 = scalar_lea.vmem %s1630_s3, 96  ;;  %p2407_p1 = scmp.lt.s32.totalorder %s1630_s3, %s1630_s3 }
 0x5bb   :  { %p2403_p0 = scmp.ne.s32.totalorder %s1630_s3, %s2402_s8  ;;  %p2408_p2 = scmp.lt.s32.totalorder %s2402_s8, %s2402_s8 }
 0x5bd   :  { %p2409_p3 = por %p2408_p2, %p2407_p1 }
 0x5bf   :  { %p2410_p4 = pnand %p2409_p3, %p2403_p0 }
 0x5c1   :  { %2413 = shalt.err (!%p2410_p4)
}
 0x5c2   :  { %s2414_s23 = scalar_lea.hbm %s2876_s13, 96 }
 0x5c3   :  { %p2415_p5 = scmp.ne.s32.totalorder %s2876_s13, %s2414_s23  ;;  %p2418_p6 = scmp.lt.u32.totalorder %s2414_s23, %s2876_s13 }
 0x5c5   :  { %p2420_p7 = pnand %p2418_p6, %p2415_p5 }
 0x5c7   :  { %2423 = shalt.err (!%p2420_p7)
}
 0x5c8   :  { %1632 = dma.vmem_to_hbm [thread:$0]  %s1630_s3, 96, %s2876_s13, [#allocation4]  }
 0x5c9   :  { %2438 = dma.done.wait [#allocation4], 96  }
 0x5ca   :  { %2439 = vsyncadd [#allocation4], 4294967200 }
 0x5cb   :  { %2440 = dma.done.wait [#allocation25], 64  }
 0x5cc   :  { %2441 = vsyncadd [#allocation25], 4294967232 }
 0x5cd   :  { %1649 = vsyncpa [#allocation3], 1 }
 0x5ce   :  { %1650 = vsyncpa [#allocation6], 1 }
 0x5cf   :  { %1651 = vsyncpa [#allocation9], 1 }
 0x5d0   :  { %1652 = vsyncpa [#allocation12], 1 }
 0x5d1   :  { %1653 = vsyncpa [#allocation15], 1 }
 0x5d2   :  { %1654 = vsyncpa [#allocation18], 1 }
 0x5d3   :  { %1655 = vsyncpa [#allocation21], 1 }
 0x5d4   :  { %1656 = vsyncpa [#allocation4], 1 }
 0x5d5   :  { %1657 = vsyncpa [#allocation25], 1 }

</bundles_post_ra>
